<compile_context>
chip_gen: v6e
topology: v6e:2x2x1
jax: 0.10.0
libtpu: 0.0.40
codegen_flags: <defaults>
</compile_context>

<pallas_src>
from functools import partial

import numpy as np
import jax
import jax.numpy as jnp
from jax.experimental import pallas as pl
from jax.experimental.pallas import tpu as pltpu

POOL_K = 36            # AvgPool1d(kernel_size=36, stride=30)
POOL_S = 30
BN_EPS = 1e-5
H1, H2, H3 = 1024, 512, 128          # branch MLP widths (fixed by the module)
BIAS_W = H1 + H2 + H3                # 1664 = 13 * 128 -> lane-aligned slices
OUT_W = 128                          # lane-dense padded head width (C <= 128)
VEC_W = BIAS_W + OUT_W               # 1792 = 14 * 128


def _pool_starts(T):
    n = (T - POOL_K) // POOL_S + 1
    return [w * POOL_S for w in range(n)]


def detect_branch_parallel():
    """True on chips with 2 TensorCores per Pallas device (v7x): run one branch
    per core.  On single-TC chips accumulate both branches in-kernel instead."""
    try:
        kind = jax.devices()[0].device_kind.lower()
    except Exception:
        return False
    return "7" in kind


def _make_kernel(starts, accumulate):
    """One grid step == one branch (audio or video).

    Refs (branch axis already squeezed by the BlockSpecs):
      x_ref    (B, T, Dmax)   bf16  channel-padded branch features
      w1_ref   (4*Dmax, H1)   int8  BN-folded, row-permuted first Linear
      w2_ref   (H1, H2)       int8  BN-folded
      w3_ref   (H2, H3)       int8  BN-folded
      vec_ref  (2, VEC_W)     f32   row0 = [b1|b2|b3|ob(branch0 only, padded)]
                                    row1 = [s1|s2|s3|ones] per-column dequant scales
      ow_ref   (H3, OUT_W)    bf16  this branch's half of the composed head (lane-padded)
      out_ref  (B, OUT_W) or (B, OUT_W)-resident accumulator  f32
    """

    def kernel(x_ref, w1_ref, w2_ref, w3_ref, vec_ref, ow_ref, out_ref):
        x = x_ref[...].astype(jnp.float32)                       # (B, T, Dmax)

        # feat.mean(1) plus the three AvgPool1d window means (reduce over T),
        # lane-concatenated into a single (B, 4*Dmax) activation so the first
        # Linear is one full-K MXU matmul.  This vector work is tiny and hides
        # under the other branch's weight DMA.
        parts = [jnp.mean(x, axis=1)]                            # (B, Dmax)
        for s0 in starts:
            parts.append(jnp.mean(x[:, s0:s0 + POOL_K, :], axis=1))
        feats = jnp.concatenate(parts, axis=1)                   # (B, 4*Dmax)

        # Packed biases / dequant scales (all slice offsets are 128-multiples).
        b1 = vec_ref[0:1, 0:H1]
        s1 = vec_ref[1:2, 0:H1]
        b2 = vec_ref[0:1, H1:H1 + H2]
        s2 = vec_ref[1:2, H1:H1 + H2]
        b3 = vec_ref[0:1, H1 + H2:BIAS_W]
        s3 = vec_ref[1:2, H1 + H2:BIAS_W]
        ob = vec_ref[0:1, BIAS_W:VEC_W]                          # head bias (branch 0)

        def deq(ref):
            # int8 -> f32 -> bf16 dequant in VMEM (scale applied post-matmul).
            return ref[...].astype(jnp.float32).astype(jnp.bfloat16)

        # 3-layer MLP; BN(eval) folded into weights/bias; int8 weights with
        # per-output-column scales folded into the f32 accumulator.
        h = jnp.dot(feats.astype(jnp.bfloat16), deq(w1_ref),
                    preferred_element_type=jnp.float32) * s1 + b1
        h = jnp.maximum(h, 0.0)
        h = jnp.dot(h.astype(jnp.bfloat16), deq(w2_ref),
                    preferred_element_type=jnp.float32) * s2 + b2
        h = jnp.maximum(h, 0.0)
        h = jnp.dot(h.astype(jnp.bfloat16), deq(w3_ref),
                    preferred_element_type=jnp.float32) * s3 + b3
        h = jnp.maximum(h, 0.0)                                  # (B, 128) embedding

        # This branch's contribution through the composed (affine) output head,
        # plus the folded head bias on branch 0 only.
        part = jnp.dot(h.astype(jnp.bfloat16), ow_ref[...],
                       preferred_element_type=jnp.float32) + ob  # (B, OUT_W)

        if accumulate:
            # Single resident output block across both grid steps ("arbitrary").
            @pl.when(pl.program_id(0) == 0)
            def _():
                out_ref[...] = part

            @pl.when(pl.program_id(0) != 0)
            def _():
                out_ref[...] = out_ref[...] + part
        else:
            # One partial block per branch ("parallel", one branch per TC on v7x).
            out_ref[...] = part

    return kernel


@partial(jax.jit, static_argnames=("num_classes", "branch_parallel"))
def mean_dt_com_t_forward(audio_feat, video_feat, kparams, num_classes,
                          branch_parallel=False):
    B, T, Da = audio_feat.shape
    _, _, Dv = video_feat.shape
    Dmax = max(Da, Dv)
    starts = _pool_starts(T)
    assert 1 + len(starts) == 4, "audio_embed expects 4*emb_dim input features"

    # Zero-pad both branches to a common channel width, stack on a leading
    # "branch" axis, and cast to bf16 (halves the activation DMA).
    a = jnp.pad(audio_feat, ((0, 0), (0, 0), (0, Dmax - Da)))
    v = jnp.pad(video_feat, ((0, 0), (0, 0), (0, Dmax - Dv)))
    x = jnp.stack([a, v], axis=0).astype(jnp.bfloat16)           # (2, B, T, Dmax)

    in_specs = [
        pl.BlockSpec((None, B, T, Dmax), lambda i: (i, 0, 0, 0)),
        pl.BlockSpec((None, 4 * Dmax, H1), lambda i: (i, 0, 0)),
        pl.BlockSpec((None, H1, H2), lambda i: (i, 0, 0)),
        pl.BlockSpec((None, H2, H3), lambda i: (i, 0, 0)),
        pl.BlockSpec((None, 2, VEC_W), lambda i: (i, 0, 0)),
        pl.BlockSpec((None, H3, OUT_W), lambda i: (i, 0, 0)),
    ]
    args = (x, kparams["W1"], kparams["W2"], kparams["W3"],
            kparams["vec"], kparams["oW"])

    if branch_parallel:
        # v7x: each TensorCore runs one branch; sum the two partial blocks.
        partial_out = pl.pallas_call(
            _make_kernel(starts, accumulate=False),
            out_shape=jax.ShapeDtypeStruct((2, B, OUT_W), jnp.float32),
            grid=(2,),
            in_specs=in_specs,
            out_specs=pl.BlockSpec((None, B, OUT_W), lambda i: (i, 0, 0)),
            compiler_params=pltpu.CompilerParams(
                dimension_semantics=("parallel",)),
        )(*args)
        logits = partial_out[0] + partial_out[1]
    else:
        # Single-TC chips: accumulate both branches into one resident block.
        logits = pl.pallas_call(
            _make_kernel(starts, accumulate=True),
            out_shape=jax.ShapeDtypeStruct((B, OUT_W), jnp.float32),
            grid=(2,),
            in_specs=in_specs,
            out_specs=pl.BlockSpec((B, OUT_W), lambda i: (0, 0)),
            compiler_params=pltpu.CompilerParams(
                dimension_semantics=("arbitrary",)),
        )(*args)

    return logits[:, :num_classes]


def init_params(key, audio_dim, video_dim, num_classes, dtype=jnp.float32):
    """Deterministic synthetic parameters in PyTorch convention
    (Linear weight (out, in); BatchNorm1d default gamma/beta/running stats)."""
    keys = iter(jax.random.split(key, 32))

    def linear(in_f, out_f):
        W = jax.random.normal(next(keys), (out_f, in_f), dtype) * 0.05
        b = jax.random.normal(next(keys), (out_f,), dtype) * 0.05
        return W, b

    def bn(n):
        return (jnp.ones((n,), dtype), jnp.zeros((n,), dtype),   # gamma, beta
                jnp.zeros((n,), dtype), jnp.ones((n,), dtype))   # r_mean, r_var

    def branch(in_dim):
        dims = [in_dim, H1, H2, H3]
        return [linear(di, do) + bn(do) for di, do in zip(dims[:-1], dims[1:])]

    return {"audio": branch(4 * audio_dim),
            "video": branch(4 * video_dim),
            "out": [linear(2 * H3, H3), linear(H3, num_classes)]}


def pack_params(ref, audio_dim, video_dim, num_classes):
    """Host-side repack into the kernel layout: fold eval-BN into the Linears,
    transpose to (in, out), re-permute / zero-pad the first Linear's rows to
    the kernel's [mean | win0 | win1 | win2] block order at the common channel
    width, quantize W1/W2/W3 to int8 with per-output-column scales, pack
    biases + scales + the folded (lane-padded) head bias into one f32 block,
    and compose the two output Linears into one (256, 128-padded) affine map
    split per branch (bf16)."""
    Dmax = max(audio_dim, video_dim)
    C = num_classes

    def fold_branch(layers, D):
        folded = []
        for (W, b, gamma, beta, rmean, rvar) in layers:
            s = gamma / jnp.sqrt(rvar + BN_EPS)
            t = beta - rmean * s
            folded.append((np.asarray(W.T * s[None, :], np.float32),   # (in, out)
                           np.asarray(b * s + t, np.float32)))
        (W1, b1), (W2, b2), (W3, b3) = folded

        # PyTorch feature order: [mean(d) | window d*3 + w]; kernel order:
        # block p*Dmax + d with p=0 -> mean, p=1..3 -> window p-1 (zero rows
        # for the padded channels d >= D).
        W1k = np.zeros((4 * Dmax, H1), np.float32)
        d = np.arange(D)
        W1k[d] = W1[d]
        for w in range(3):
            W1k[(w + 1) * Dmax + d] = W1[D + 3 * d + w]
        return (W1k, W2, W3), (b1, b2, b3)

    aW, ab = fold_branch(ref["audio"], audio_dim)
    vW, vb = fold_branch(ref["video"], video_dim)

    # Compose outputLayer = Linear(256,128) o Linear(128,C) (no nonlinearity),
    # then zero-pad the C output columns to a lane-dense width of 128.
    (oW1, ob1), (oW2, ob2) = ref["out"]
    oW = np.asarray(oW1.T @ oW2.T, np.float32)                   # (256, C)
    ob = np.asarray(ob1 @ oW2.T + ob2, np.float32)               # (C,)
    oW_pad = np.zeros((2 * H3, OUT_W), np.float32)
    oW_pad[:, :C] = oW
    ob_pad = np.zeros((OUT_W,), np.float32)
    ob_pad[:C] = ob

    def quant_cols(W):
        amax = np.max(np.abs(W), axis=0)
        scale = np.where(amax > 0.0, amax / 127.0, 1.0).astype(np.float32)
        q = np.clip(np.rint(W / scale[None, :]), -127, 127).astype(np.int8)
        return q, scale

    def branch_pack(Ws, bs, ob_tail):
        (W1k, W2, W3) = Ws
        (b1, b2, b3) = bs
        q1, s1 = quant_cols(W1k)
        q2, s2 = quant_cols(W2)
        q3, s3 = quant_cols(W3)
        row0 = np.concatenate([b1, b2, b3, ob_tail]).astype(np.float32)
        row1 = np.concatenate([s1, s2, s3,
                               np.ones((OUT_W,), np.float32)]).astype(np.float32)
        return q1, q2, q3, np.stack([row0, row1])                # vec (2, VEC_W)

    aq1, aq2, aq3, avec = branch_pack(aW, ab, ob_pad)
    vq1, vq2, vq3, vvec = branch_pack(vW, vb, np.zeros((OUT_W,), np.float32))

    return {
        "W1": jnp.asarray(np.stack([aq1, vq1])),                 # (2, 4*Dmax, 1024) int8
        "W2": jnp.asarray(np.stack([aq2, vq2])),                 # (2, 1024, 512)   int8
        "W3": jnp.asarray(np.stack([aq3, vq3])),                 # (2, 512, 128)    int8
        "vec": jnp.asarray(np.stack([avec, vvec])),              # (2, 2, 1792)     f32
        "oW": jnp.asarray(np.stack([oW_pad[:H3],
                                    oW_pad[H3:]])).astype(jnp.bfloat16),  # (2,128,128)
    }


def reference_forward(audio_feat, video_feat, ref):
    """Pure-JAX, full-precision mirror of the PyTorch forward (eval-mode BN)."""
    def avg_pool_flat(x):                    # == AvgPool1d on (B,D,T) + flatten(1)
        B, T, D = x.shape
        cols = [jnp.mean(x[:, s0:s0 + POOL_K, :], axis=1) for s0 in _pool_starts(T)]
        return jnp.stack(cols, axis=-1).reshape(B, -1)           # index d*3 + w

    def seq(x, layers):
        for (W, b, gamma, beta, rmean, rvar) in layers:
            x = x @ W.T + b
            x = (x - rmean) / jnp.sqrt(rvar + BN_EPS) * gamma + beta
            x = jnp.maximum(x, 0.0)
        return x

    a = jnp.concatenate([audio_feat.mean(axis=1), avg_pool_flat(audio_feat)], axis=1)
    v = jnp.concatenate([video_feat.mean(axis=1), avg_pool_flat(video_feat)], axis=1)
    a = seq(a, ref["audio"])
    v = seq(v, ref["video"])
    e = jnp.concatenate([a, v], axis=1)
    (W1, b1), (W2, b2) = ref["out"]
    return (e @ W1.T + b1) @ W2.T + b2


if __name__ == "__main__":
    B, T = 2, 96                 # T=96 -> 3 AvgPool windows -> 4*emb_dim features
    audio_dim, video_dim, num_classes = 32, 64, 10

    key = jax.random.PRNGKey(0)
    k1, k2, k3 = jax.random.split(key, 3)
    audio = jax.random.normal(k1, (B, T, audio_dim), jnp.float32)
    video = jax.random.normal(k2, (B, T, video_dim), jnp.float32)

    ref = init_params(k3, audio_dim, video_dim, num_classes)
    kparams = pack_params(ref, audio_dim, video_dim, num_classes)

    branch_parallel = detect_branch_parallel()
    out = mean_dt_com_t_forward(audio, video, kparams, num_classes,
                                branch_parallel=branch_parallel)
    out = jax.block_until_ready(out)

    expected = reference_forward(audio, video, ref)
    assert out.shape == (B, num_classes)
    # int8 weights (per-column scales) + bf16 activations/inputs, f32 accumulate,
    # vs the full-precision reference: tolerance sized for the quantization and
    # bf16 rounding accumulated through four matmul layers.
    np.testing.assert_allclose(np.asarray(out), np.asarray(expected),
                               rtol=5e-2, atol=1e-2)
    print("KERNEL_OK")
</pallas_src>

<mosaic_0001>
module attributes {stable_mosaic.version = 11 : i64} {
  func.func @kernel(%arg0: i32, %arg1: memref<1x2x96x64xbf16, #tpu.memory_space<vmem>>, %arg2: memref<1x256x1024xi8, #tpu.memory_space<vmem>>, %arg3: memref<1x1024x512xi8, #tpu.memory_space<vmem>>, %arg4: memref<1x512x128xi8, #tpu.memory_space<vmem>>, %arg5: memref<1x2x1792xf32, #tpu.memory_space<vmem>>, %arg6: memref<1x128x128xbf16, #tpu.memory_space<vmem>>, %arg7: memref<2x128xf32, #tpu.memory_space<vmem>>) attributes {dimension_semantics = [#tpu.dimension_semantics<arbitrary>], iteration_bounds = array<i64: 2>, scalar_prefetch = 0 : i64, scratch_operands = 0 : i64, tpu.core_type = #tpu.core_type<tc>, window_params = [{transform_indices = @transform_0, window_bounds = array<i64: 1, 2, 96, 64>}, {transform_indices = @transform_1, window_bounds = array<i64: 1, 256, 1024>}, {transform_indices = @transform_2, window_bounds = array<i64: 1, 1024, 512>}, {transform_indices = @transform_3, window_bounds = array<i64: 1, 512, 128>}, {transform_indices = @transform_4, window_bounds = array<i64: 1, 2, 1792>}, {transform_indices = @transform_5, window_bounds = array<i64: 1, 128, 128>}, {pipeline_mode = #tpu.pipeline_mode<synchronous>, transform_indices = @transform_6, window_bounds = array<i64: 2, 128>}]} {
    %c0 = arith.constant 0 : index
    %c0_0 = arith.constant 0 : index
    %c0_1 = arith.constant 0 : index
    %c0_2 = arith.constant 0 : index
    %0 = vector.load %arg1[%c0, %c0_0, %c0_1, %c0_2] : memref<1x2x96x64xbf16, #tpu.memory_space<vmem>>, vector<1x2x96x64xbf16>
    %1 = vector.shape_cast %0 : vector<1x2x96x64xbf16> to vector<2x96x64xbf16>
    %2 = arith.extf %1 : vector<2x96x64xbf16> to vector<2x96x64xf32>
    %cst = arith.constant dense<0.000000e+00> : vector<2x64xf32>
    %3 = vector.multi_reduction <add>, %2, %cst [1] : vector<2x96x64xf32> to vector<2x64xf32>
    %cst_3 = arith.constant 9.600000e+01 : f32
    %4 = vector.broadcast %cst_3 : f32 to vector<2x64xf32>
    %5 = arith.divf %3, %4 : vector<2x64xf32>
    %6 = vector.extract_strided_slice %2 {offsets = [0, 0, 0], sizes = [2, 36, 64], strides = [1, 1, 1]} : vector<2x96x64xf32> to vector<2x36x64xf32>
    %cst_4 = arith.constant dense<0.000000e+00> : vector<2x64xf32>
    %7 = vector.multi_reduction <add>, %6, %cst_4 [1] : vector<2x36x64xf32> to vector<2x64xf32>
    %cst_5 = arith.constant 3.600000e+01 : f32
    %8 = vector.broadcast %cst_5 : f32 to vector<2x64xf32>
    %9 = arith.divf %7, %8 : vector<2x64xf32>
    %10 = vector.extract_strided_slice %2 {offsets = [0, 30, 0], sizes = [2, 36, 64], strides = [1, 1, 1]} : vector<2x96x64xf32> to vector<2x36x64xf32>
    %cst_6 = arith.constant dense<0.000000e+00> : vector<2x64xf32>
    %11 = vector.multi_reduction <add>, %10, %cst_6 [1] : vector<2x36x64xf32> to vector<2x64xf32>
    %cst_7 = arith.constant 3.600000e+01 : f32
    %12 = vector.broadcast %cst_7 : f32 to vector<2x64xf32>
    %13 = arith.divf %11, %12 : vector<2x64xf32>
    %14 = vector.extract_strided_slice %2 {offsets = [0, 60, 0], sizes = [2, 36, 64], strides = [1, 1, 1]} : vector<2x96x64xf32> to vector<2x36x64xf32>
    %cst_8 = arith.constant dense<0.000000e+00> : vector<2x64xf32>
    %15 = vector.multi_reduction <add>, %14, %cst_8 [1] : vector<2x36x64xf32> to vector<2x64xf32>
    %cst_9 = arith.constant 3.600000e+01 : f32
    %16 = vector.broadcast %cst_9 : f32 to vector<2x64xf32>
    %17 = arith.divf %15, %16 : vector<2x64xf32>
    %18 = tpu.concatenate %5, %9, %13, %17 in 1 : vector<2x64xf32>, vector<2x64xf32>, vector<2x64xf32>, vector<2x64xf32> -> vector<2x256xf32>
    %c0_10 = arith.constant 0 : index
    %c0_11 = arith.constant 0 : index
    %c0_12 = arith.constant 0 : index
    %19 = vector.load %arg5[%c0_10, %c0_11, %c0_12] : memref<1x2x1792xf32, #tpu.memory_space<vmem>>, vector<1x1x1024xf32>
    %20 = vector.shape_cast %19 : vector<1x1x1024xf32> to vector<1x1024xf32>
    %c0_13 = arith.constant 0 : index
    %c1 = arith.constant 1 : index
    %c0_14 = arith.constant 0 : index
    %21 = vector.load %arg5[%c0_13, %c1, %c0_14] : memref<1x2x1792xf32, #tpu.memory_space<vmem>>, vector<1x1x1024xf32>
    %22 = vector.shape_cast %21 : vector<1x1x1024xf32> to vector<1x1024xf32>
    %c0_15 = arith.constant 0 : index
    %c0_16 = arith.constant 0 : index
    %c1024 = arith.constant 1024 : index
    %23 = vector.load %arg5[%c0_15, %c0_16, %c1024] : memref<1x2x1792xf32, #tpu.memory_space<vmem>>, vector<1x1x512xf32>
    %24 = vector.shape_cast %23 : vector<1x1x512xf32> to vector<1x512xf32>
    %c0_17 = arith.constant 0 : index
    %c1_18 = arith.constant 1 : index
    %c1024_19 = arith.constant 1024 : index
    %25 = vector.load %arg5[%c0_17, %c1_18, %c1024_19] : memref<1x2x1792xf32, #tpu.memory_space<vmem>>, vector<1x1x512xf32>
    %26 = vector.shape_cast %25 : vector<1x1x512xf32> to vector<1x512xf32>
    %c0_20 = arith.constant 0 : index
    %c0_21 = arith.constant 0 : index
    %c1536 = arith.constant 1536 : index
    %27 = vector.load %arg5[%c0_20, %c0_21, %c1536] : memref<1x2x1792xf32, #tpu.memory_space<vmem>>, vector<1x1x128xf32>
    %28 = vector.shape_cast %27 : vector<1x1x128xf32> to vector<1x128xf32>
    %c0_22 = arith.constant 0 : index
    %c1_23 = arith.constant 1 : index
    %c1536_24 = arith.constant 1536 : index
    %29 = vector.load %arg5[%c0_22, %c1_23, %c1536_24] : memref<1x2x1792xf32, #tpu.memory_space<vmem>>, vector<1x1x128xf32>
    %30 = vector.shape_cast %29 : vector<1x1x128xf32> to vector<1x128xf32>
    %c0_25 = arith.constant 0 : index
    %c0_26 = arith.constant 0 : index
    %c1664 = arith.constant 1664 : index
    %31 = vector.load %arg5[%c0_25, %c0_26, %c1664] : memref<1x2x1792xf32, #tpu.memory_space<vmem>>, vector<1x1x128xf32>
    %32 = vector.shape_cast %31 : vector<1x1x128xf32> to vector<1x128xf32>
    %33 = arith.truncf %18 : vector<2x256xf32> to vector<2x256xbf16>
    %c0_27 = arith.constant 0 : index
    %c0_28 = arith.constant 0 : index
    %c0_29 = arith.constant 0 : index
    %34 = vector.load %arg2[%c0_27, %c0_28, %c0_29] : memref<1x256x1024xi8, #tpu.memory_space<vmem>>, vector<1x256x1024xi8>
    %35 = vector.shape_cast %34 : vector<1x256x1024xi8> to vector<256x1024xi8>
    %36 = arith.sitofp %35 : vector<256x1024xi8> to vector<256x1024xf32>
    %37 = arith.truncf %36 : vector<256x1024xf32> to vector<256x1024xbf16>
    %cst_30 = arith.constant dense<0.000000e+00> : vector<2x1024xf32>
    %38 = tpu.matmul %33, %37, %cst_30 {dimension_numbers = #tpu.dot_dimension_numbers<[1], [0], [0], [1], [0, 0, 1, 1], [], []>} : vector<2x256xbf16>, vector<256x1024xbf16>, vector<2x1024xf32> -> vector<2x1024xf32>
    %39 = vector.broadcast %22 : vector<1x1024xf32> to vector<2x1024xf32>
    %40 = arith.mulf %38, %39 : vector<2x1024xf32>
    %41 = vector.broadcast %20 : vector<1x1024xf32> to vector<2x1024xf32>
    %42 = arith.addf %40, %41 : vector<2x1024xf32>
    %cst_31 = arith.constant 0.000000e+00 : f32
    %43 = vector.broadcast %cst_31 : f32 to vector<2x1024xf32>
    %44 = arith.maximumf %42, %43 : vector<2x1024xf32>
    %45 = arith.truncf %44 : vector<2x1024xf32> to vector<2x1024xbf16>
    %c0_32 = arith.constant 0 : index
    %c0_33 = arith.constant 0 : index
    %c0_34 = arith.constant 0 : index
    %46 = vector.load %arg3[%c0_32, %c0_33, %c0_34] : memref<1x1024x512xi8, #tpu.memory_space<vmem>>, vector<1x1024x512xi8>
    %47 = vector.shape_cast %46 : vector<1x1024x512xi8> to vector<1024x512xi8>
    %48 = arith.sitofp %47 : vector<1024x512xi8> to vector<1024x512xf32>
    %49 = arith.truncf %48 : vector<1024x512xf32> to vector<1024x512xbf16>
    %cst_35 = arith.constant dense<0.000000e+00> : vector<2x512xf32>
    %50 = tpu.matmul %45, %49, %cst_35 {dimension_numbers = #tpu.dot_dimension_numbers<[1], [0], [0], [1], [0, 0, 1, 1], [], []>} : vector<2x1024xbf16>, vector<1024x512xbf16>, vector<2x512xf32> -> vector<2x512xf32>
    %51 = vector.broadcast %26 : vector<1x512xf32> to vector<2x512xf32>
    %52 = arith.mulf %50, %51 : vector<2x512xf32>
    %53 = vector.broadcast %24 : vector<1x512xf32> to vector<2x512xf32>
    %54 = arith.addf %52, %53 : vector<2x512xf32>
    %cst_36 = arith.constant 0.000000e+00 : f32
    %55 = vector.broadcast %cst_36 : f32 to vector<2x512xf32>
    %56 = arith.maximumf %54, %55 : vector<2x512xf32>
    %57 = arith.truncf %56 : vector<2x512xf32> to vector<2x512xbf16>
    %c0_37 = arith.constant 0 : index
    %c0_38 = arith.constant 0 : index
    %c0_39 = arith.constant 0 : index
    %58 = vector.load %arg4[%c0_37, %c0_38, %c0_39] : memref<1x512x128xi8, #tpu.memory_space<vmem>>, vector<1x512x128xi8>
    %59 = vector.shape_cast %58 : vector<1x512x128xi8> to vector<512x128xi8>
    %60 = arith.sitofp %59 : vector<512x128xi8> to vector<512x128xf32>
    %61 = arith.truncf %60 : vector<512x128xf32> to vector<512x128xbf16>
    %cst_40 = arith.constant dense<0.000000e+00> : vector<2x128xf32>
    %62 = tpu.matmul %57, %61, %cst_40 {dimension_numbers = #tpu.dot_dimension_numbers<[1], [0], [0], [1], [0, 0, 1, 1], [], []>} : vector<2x512xbf16>, vector<512x128xbf16>, vector<2x128xf32> -> vector<2x128xf32>
    %63 = vector.broadcast %30 : vector<1x128xf32> to vector<2x128xf32>
    %64 = arith.mulf %62, %63 : vector<2x128xf32>
    %65 = vector.broadcast %28 : vector<1x128xf32> to vector<2x128xf32>
    %66 = arith.addf %64, %65 : vector<2x128xf32>
    %cst_41 = arith.constant 0.000000e+00 : f32
    %67 = vector.broadcast %cst_41 : f32 to vector<2x128xf32>
    %68 = arith.maximumf %66, %67 : vector<2x128xf32>
    %69 = arith.truncf %68 : vector<2x128xf32> to vector<2x128xbf16>
    %c0_42 = arith.constant 0 : index
    %c0_43 = arith.constant 0 : index
    %c0_44 = arith.constant 0 : index
    %70 = vector.load %arg6[%c0_42, %c0_43, %c0_44] : memref<1x128x128xbf16, #tpu.memory_space<vmem>>, vector<1x128x128xbf16>
    %71 = vector.shape_cast %70 : vector<1x128x128xbf16> to vector<128x128xbf16>
    %cst_45 = arith.constant dense<0.000000e+00> : vector<2x128xf32>
    %72 = tpu.matmul %69, %71, %cst_45 {dimension_numbers = #tpu.dot_dimension_numbers<[1], [0], [0], [1], [0, 0, 1, 1], [], []>} : vector<2x128xbf16>, vector<128x128xbf16>, vector<2x128xf32> -> vector<2x128xf32>
    %73 = vector.broadcast %32 : vector<1x128xf32> to vector<2x128xf32>
    %74 = arith.addf %72, %73 : vector<2x128xf32>
    %c0_i32 = arith.constant 0 : i32
    %75 = arith.cmpi eq, %arg0, %c0_i32 : i32
    %76 = arith.extui %75 : i1 to i32
    %c0_i32_46 = arith.constant 0 : i32
    %77 = arith.cmpi ne, %76, %c0_i32_46 : i32
    scf.if %77 {
      %c0_49 = arith.constant 0 : index
      %c0_50 = arith.constant 0 : index
      %81 = vector.load %arg7[%c0_49, %c0_50] : memref<2x128xf32, #tpu.memory_space<vmem>>, vector<2x128xf32>
      tpu.vector_store %arg7[%c0_49, %c0_50], %74 {strides = array<i32>} : memref<2x128xf32, #tpu.memory_space<vmem>>, vector<2x128xf32>,
    } else {
    }
    %c0_i32_47 = arith.constant 0 : i32
    %78 = arith.cmpi ne, %arg0, %c0_i32_47 : i32
    %79 = arith.extui %78 : i1 to i32
    %c0_i32_48 = arith.constant 0 : i32
    %80 = arith.cmpi ne, %79, %c0_i32_48 : i32
    scf.if %80 {
      %c0_49 = arith.constant 0 : index
      %c0_50 = arith.constant 0 : index
      %81 = vector.load %arg7[%c0_49, %c0_50] : memref<2x128xf32, #tpu.memory_space<vmem>>, vector<2x128xf32>
      %82 = arith.addf %81, %74 : vector<2x128xf32>
      %c0_51 = arith.constant 0 : index
      %c0_52 = arith.constant 0 : index
      %83 = vector.load %arg7[%c0_51, %c0_52] : memref<2x128xf32, #tpu.memory_space<vmem>>, vector<2x128xf32>
      tpu.vector_store %arg7[%c0_51, %c0_52], %82 {strides = array<i32>} : memref<2x128xf32, #tpu.memory_space<vmem>>, vector<2x128xf32>,
    } else {
    }
    return
  }
  func.func @transform_0(%arg0: i32) -> (i32, i32, i32, i32) {
    %c0_i32 = arith.constant 0 : i32
    %c0_i32_0 = arith.constant 0 : i32
    %c0_i32_1 = arith.constant 0 : i32
    %c0_i32_2 = arith.constant 0 : i32
    return %arg0, %c0_i32, %c0_i32_0, %c0_i32_1 : i32, i32, i32, i32
  }
  func.func @transform_1(%arg0: i32) -> (i32, i32, i32) {
    %c0_i32 = arith.constant 0 : i32
    %c0_i32_0 = arith.constant 0 : i32
    %c0_i32_1 = arith.constant 0 : i32
    return %arg0, %c0_i32, %c0_i32_0 : i32, i32, i32
  }
  func.func @transform_2(%arg0: i32) -> (i32, i32, i32) {
    %c0_i32 = arith.constant 0 : i32
    %c0_i32_0 = arith.constant 0 : i32
    %c0_i32_1 = arith.constant 0 : i32
    return %arg0, %c0_i32, %c0_i32_0 : i32, i32, i32
  }
  func.func @transform_3(%arg0: i32) -> (i32, i32, i32) {
    %c0_i32 = arith.constant 0 : i32
    %c0_i32_0 = arith.constant 0 : i32
    %c0_i32_1 = arith.constant 0 : i32
    return %arg0, %c0_i32, %c0_i32_0 : i32, i32, i32
  }
  func.func @transform_4(%arg0: i32) -> (i32, i32, i32) {
    %c0_i32 = arith.constant 0 : i32
    %c0_i32_0 = arith.constant 0 : i32
    %c0_i32_1 = arith.constant 0 : i32
    return %arg0, %c0_i32, %c0_i32_0 : i32, i32, i32
  }
  func.func @transform_5(%arg0: i32) -> (i32, i32, i32) {
    %c0_i32 = arith.constant 0 : i32
    %c0_i32_0 = arith.constant 0 : i32
    %c0_i32_1 = arith.constant 0 : i32
    return %arg0, %c0_i32, %c0_i32_0 : i32, i32, i32
  }
  func.func @transform_6(%arg0: i32) -> (i32, i32) {
    %c0_i32 = arith.constant 0 : i32
    %c0_i32_0 = arith.constant 0 : i32
    %c0_i32_1 = arith.constant 0 : i32
    return %c0_i32, %c0_i32_0 : i32, i32
  }
}

</mosaic_0001>

<bundles_post_ra>
// kernel: mean_dt_com_t_forward.1
= control target key start
LH: loop header
LB: loop body
LE: loop exit
PB: predicated region body
PF: predicated region fallthrough
CT: control target
= control target key end

     0   :  { %s3694_s0 = inlined_call_operand.vmem [shape: bf16[2,2,96,64], index: 0, kind: input, shape index: {}]   ;;  %s3695_s1 = inlined_call_operand.vmem [shape: s8[2,256,1024], index: 1, kind: input, shape index: {}]   ;;  %s3696_s2 = inlined_call_operand.hbm [shape: s8[2,1024,512], index: 2, kind: input, shape index: {}]   ;;  %s3697_s3 = inlined_call_operand.hbm [shape: s8[2,512,128], index: 3, kind: input, shape index: {}]   ;;  %s3698_s4 = inlined_call_operand.hbm [shape: f32[2,2,1792], index: 4, kind: input, shape index: {}]   ;;  %s3699_s5 = inlined_call_operand.hbm [shape: bf16[2,128,128], index: 5, kind: input, shape index: {}]   ;;  %s3700_s6 = inlined_call_operand.hbm [shape: f32[2,128], index: 6, kind: output, shape index: {}]  }
   0x1   :  { %3703 = sst [smem:[#allocation16_spill]] %s3696_s2 }
   0x2   :  { %3704 = sst [smem:[#allocation17_spill]] %s3697_s3 }
   0x3   :  { %11 = vsyncpa [#allocation3], 0 }
   0x4   :  { %13 = vsyncpa [#allocation3 + $0x1], 0 }
   0x5   :  { %14 = vsyncpa [#allocation6], 0 }
   0x6   :  { %16 = vsyncpa [#allocation6 + $0x1], 0 }
   0x7   :  { %17 = vsyncpa [#allocation9], 0 }
   0x8   :  { %19 = vsyncpa [#allocation9 + $0x1], 0 }
   0x9   :  { %20 = vsyncpa [#allocation4], 0  ;;  %s2866_s21 = smov 0   ;;  %s2868_s22 = smov 0  }
   0xa   :  { %s2870_s23 = smov 0   ;;  %s2872_s24 = smov 0  }
   0xb LB: > { %s2885_s25 = sadd.s32 4294967295, %s2815_s24   ;;  %s2888_s26 = sadd.s32 1, %s2815_s24   ;;  %s2815_s24 = sphi %s2872_s24, %s3719_s24   ;;  %s2811_s23 = sphi %s2870_s23, %s3718_s23   ;;  %s2807_s22 = sphi %s2868_s22, %s3717_s22   ;;  %s2803_s21 = sphi %s2866_s21, %s3716_s21  }
   0xc   : > { %s82_s27 = ssub.s32 %s2815_s24, %s2888_s26  ;;  %s85_s28 = sadd.s32 1, %s2811_s23 }
   0xd   : > { %p83_p0 = scmp.eq.s32.totalorder %s82_s27, 0  ;;  %p92_p1 = scmp.ne.s32.totalorder %s2811_s23, %s2807_s22 }
   0xe   : > { %p93_p2 = scmp.eq.s32.totalorder %s2815_s24, 0  ;;  %p98_p3 = scmp.ne.s32.totalorder %s2807_s22, %s2803_s21 }
   0xf   : > { %s2898_s29 = scalar_select %p83_p0, %s2811_s23, %s85_s28  }
  0x10   : > { %p94_p4 = por %p93_p2, %p92_p1  ;;  %p3701_p5 = scmp.eq.s32.totalorder %s2885_s25, 0 }
  0x11   : > { %3705 = sst [smem:[#allocation15_spill]] %s2898_s29  ;;  %p2575_p6 = scmp.lt.s32.totalorder %s2815_s24, 2 }
  0x12   : > { %p2904_p7 = por %p3701_p5, %p98_p3  ;;  %s2909_s7 = sand.u32 1, %s2811_s23  }
  0x13   : > { %p2911_p8 = pnand %p2575_p6, %p94_p4  ;;  %s258_s9 = sand.u32 1, %s2815_s24  }
  0x14   : > { %s3706_s30 = scalar_select %p2904_p7, 1, 0 }
  0x15   : > { %s2376_s10 = sshll.u32 %s2909_s7, 7  ;;  %s2411_s11 = sshll.u32 %s2815_s24, 11 }
  0x16   : > { %s262_s12 = scalar_lea.vmem [#allocation5], %s2376_s10  ;;  %s3708_s3 = sld [smem:[#allocation17_spill]] }
  0x17   : > { %s269_s13 = sshll.u32 %s262_s12, 4  ;;  %s2925_s17 = scalar_lea.sflag [#allocation6], %s258_s9  ;;  %s2923_s13 = int_to_ptr.vmem [resolvable:$true] %s269_s13 }
  0x18   : > { %p2931_p10 = pneg %p2911_p8 }
  0x1c   : > { %s2921_s16 = scalar_lea.hbm %s3708_s3, %s2411_s11  ;;  %s2638_s27 = scalar_lea.hbm %s3708_s3, 4096 }
  0x1d   : > { %s2633_s18 = scalar_lea.hbm %s2921_s16, 2048  ;;  %p2639_p13 = scmp.lt.s32.totalorder %s2921_s16, %s3708_s3 }
  0x1e   : > { %p2634_p9 = scmp.ne.s32.totalorder %s2921_s16, %s2633_s18  ;;  %p2640_p0 = scmp.lt.s32.totalorder %s2638_s27, %s2633_s18 }
  0x20   : > { %p2636_p11 = pnand %p2931_p10, %p2634_p9  ;;  %p2641_p1 = por %p2640_p0, %p2639_p13 }
  0x22   : > { %p2637_p12 = pneg %p2636_p11 }
  0x24   : > { %p2642_p2 = pnand %p2641_p1, %p2637_p12 }
  0x26   : > { %2645 = shalt.err (!%p2642_p2)
}
  0x27   : > { %s2646_s9 = scalar_lea.vmem %s2923_s13, 2048  ;;  %s2817_s11 = smov [#allocation5]  }
  0x28   : > { %p2647_p3 = scmp.ne.s32.totalorder %s2923_s13, %s2646_s9  ;;  %s2651_s12 = sshll.u32 %s2817_s11, 4  ;;  %s2652_s12 = int_to_ptr.vmem [resolvable:$false] %s2651_s12 }
  0x29   : > { %s2653_s14 = scalar_lea.vmem %s2652_s12, 4096  ;;  %p2654_p9 = scmp.lt.s32.totalorder %s2923_s13, %s2652_s12 }
  0x2a   : > { %p2649_p4 = pnand %p2647_p3, %p2931_p10  ;;  %p2655_p11 = scmp.lt.s32.totalorder %s2653_s14, %s2646_s9 }
  0x2c   : > { %p2650_p6 = pneg %p2649_p4  ;;  %p2656_p5 = por %p2655_p11, %p2654_p9 }
  0x2e   : > { %p2657_p7 = pnand %p2656_p5, %p2650_p6 }
  0x30   : > { %2660 = shalt.err (!%p2657_p7)
}
  0x31   : > { %s2818_s15 = smov 128   ;;  %s2819_s18 = smov 8  }
  0x32   : > { %2568 = dma.hbm_to_vmem [thread:$0]  (!%p2911_p8), %s2921_s16, 2048, %s2923_s13, %s2925_s17, %s2818_s15, %s2818_s15, %s2819_s18  }
  0x33   : > { %p2383_p12 = scmp.ge.s32.totalorder %s2815_s24, 1  ;;  %p317_p13 = scmp.lt.s32.totalorder %s2815_s24, 3 }
  0x34   : > { %s2373_s20 = sshll.u32 %s2909_s7, 10  ;;  %s2410_s27 = sshll.u32 %s2815_s24, 14 }
  0x35   : > { %p2957_p0 = pnand %p2383_p12, %p317_p13  ;;  %s241_s28 = scalar_lea.vmem [#allocation2], %s2373_s20 }
  0x36   : > { %s248_s10 = sshll.u32 %s241_s28, 4  ;;  %s3711_s2 = sld [smem:[#allocation16_spill]]  ;;  %s2967_s10 = int_to_ptr.vmem [resolvable:$true] %s248_s10 }
  0x37   : > { %s3710_s21 = scalar_select %p2957_p0, 1, 0 }
  0x38   : > { %s238_s13 = scalar_lea.sflag [#allocation3], %s2909_s7 }
  0x3c   : > { %s2965_s12 = scalar_lea.hbm %s3711_s2, %s2410_s27  ;;  %s2666_s18 = scalar_lea.hbm %s3711_s2, 32768 }
  0x3d   : > { %s2661_s16 = scalar_lea.hbm %s2965_s12, 16384  ;;  %p2667_p2 = scmp.lt.s32.totalorder %s2965_s12, %s3711_s2 }
  0x3e   : > { %p2662_p5 = scmp.ne.s32.totalorder %s2965_s12, %s2661_s16  ;;  %p2668_p3 = scmp.lt.s32.totalorder %s2666_s18, %s2661_s16 }
  0x40   : > { %p2664_p7 = pnand %p2662_p5, %p2931_p10  ;;  %p2669_p4 = por %p2668_p3, %p2667_p2 }
  0x42   : > { %p2665_p1 = pneg %p2664_p7 }
  0x44   : > { %p2670_p6 = pnand %p2669_p4, %p2665_p1 }
  0x46   : > { %2673 = shalt.err (!%p2670_p6)
}
  0x47   : > { %s2674_s27 = scalar_lea.vmem %s2967_s10, 16384  ;;  %s2820_s9 = smov [#allocation2]  }
  0x48   : > { %p2675_p9 = scmp.ne.s32.totalorder %s2967_s10, %s2674_s27  ;;  %s2679_s11 = sshll.u32 %s2820_s9, 4  ;;  %s2680_s11 = int_to_ptr.vmem [resolvable:$false] %s2679_s11 }
  0x49   : > { %s2681_s14 = scalar_lea.vmem %s2680_s11, 32768  ;;  %p2682_p13 = scmp.lt.s32.totalorder %s2967_s10, %s2680_s11 }
  0x4a   : > { %p2677_p11 = pnand %p2675_p9, %p2931_p10  ;;  %p2683_p5 = scmp.lt.s32.totalorder %s2681_s14, %s2674_s27 }
  0x4c   : > { %p2678_p12 = pneg %p2677_p11  ;;  %p2684_p7 = por %p2683_p5, %p2682_p13 }
  0x4e   : > { %p2685_p0 = pnand %p2684_p7, %p2678_p12 }
  0x50   : > { %2688 = shalt.err (!%p2685_p0)
}
  0x51   : > { %s2821_s16 = smov 512   ;;  %s2822_s15 = smov 32  }
  0x52   : > { %2565 = dma.hbm_to_vmem [thread:$0]  (!%p2911_p8), %s2965_s12, 16384, %s2967_s10, %s238_s13, %s2821_s16, %s2821_s16, %s2822_s15  }
  0x53   : > { %s2546_s18 = smul.u32 28, %s2909_s7  ;;  %s2380_s28 = sshll.u32 %s2909_s7, 6 }
  0x54   : > { %s2547_s20 = smul.u32 448, %s2815_s24  ;;  %s2412_s3 = sshll.u32 %s2815_s24, 10 }
  0x55   : > { %s283_s14 = scalar_lea.vmem [#allocation7], %s2546_s18  ;;  %s2694_s13 = scalar_lea.hbm %s3698_s4, 896 }
  0x56   : > { %s2998_s11 = scalar_lea.hbm %s3698_s4, %s2547_s20  ;;  %s291_s2 = sshll.u32 %s283_s14, 4  ;;  %s292_s2 = int_to_ptr.vmem [resolvable:$true] %s291_s2 }
  0x57   : > { %s2689_s29 = scalar_lea.hbm %s2998_s11, 448  ;;  %p2695_p3 = scmp.lt.s32.totalorder %s2998_s11, %s3698_s4 }
  0x58   : > { %p2690_p0 = scmp.ne.s32.totalorder %s2998_s11, %s2689_s29  ;;  %p2696_p4 = scmp.lt.s32.totalorder %s2694_s13, %s2689_s29 }
  0x5a   : > { %p2692_p1 = pnand %p2690_p0, %p2931_p10  ;;  %p2697_p6 = por %p2696_p4, %p2695_p3 }
  0x5c   : > { %p2693_p2 = pneg %p2692_p1 }
  0x5e   : > { %p2698_p9 = pnand %p2697_p6, %p2693_p2 }
  0x60   : > { %2701 = shalt.err (!%p2698_p9)
}
  0x61   : > { %s2702_s18 = scalar_lea.vmem %s292_s2, 448  ;;  %s2823_s24 = smov [#allocation7]  }
  0x62   : > { %p2703_p11 = scmp.ne.s32.totalorder %s292_s2, %s2702_s18  ;;  %s2707_s20 = sshll.u32 %s2823_s24, 4  ;;  %s2708_s20 = int_to_ptr.vmem [resolvable:$false] %s2707_s20 }
  0x63   : > { %s2709_s27 = scalar_lea.vmem %s2708_s20, 896  ;;  %p2710_p5 = scmp.lt.s32.totalorder %s292_s2, %s2708_s20 }
  0x64   : > { %p2705_p12 = pnand %p2703_p11, %p2931_p10  ;;  %p2711_p7 = scmp.lt.s32.totalorder %s2709_s27, %s2702_s18 }
  0x66   : > { %p2706_p13 = pneg %p2705_p12  ;;  %p2712_p0 = por %p2711_p7, %p2710_p5 }
  0x68   : > { %p2713_p1 = pnand %p2712_p0, %p2706_p13 }
  0x6a   : > { %2716 = shalt.err (!%p2713_p1)
}
  0x6b   : > { %2571 = dma.hbm_to_vmem [thread:$0]  (!%p2911_p8), %s2998_s11, 448, %s292_s2, %s2925_s17  }
  0x6c   : > { %s3021_s14 = scalar_lea.hbm %s3699_s5, %s2412_s3  ;;  %s302_s10 = scalar_lea.vmem [#allocation8], %s2380_s28 }
  0x6d   : > { %s309_s12 = sshll.u32 %s302_s10, 4  ;;  %s299_s13 = scalar_lea.sflag [#allocation9], %s2909_s7  ;;  %s3025_s12 = int_to_ptr.vmem [resolvable:$true] %s309_s12 }
  0x6e   : > { %s2717_s16 = scalar_lea.hbm %s3021_s14, 1024  ;;  %s2722_s11 = scalar_lea.hbm %s3699_s5, 2048 }
  0x6f   : > { %p2718_p2 = scmp.ne.s32.totalorder %s3021_s14, %s2717_s16  ;;  %p2723_p6 = scmp.lt.s32.totalorder %s3021_s14, %s3699_s5 }
  0x70   : > { %p2724_p9 = scmp.lt.s32.totalorder %s2722_s11, %s2717_s16 }
  0x71   : > { %p2720_p3 = pnand %p2718_p2, %p2931_p10 }
  0x72   : > { %p2725_p11 = por %p2724_p9, %p2723_p6 }
  0x73   : > { %p2721_p4 = pneg %p2720_p3 }
  0x75   : > { %p2726_p12 = pnand %p2725_p11, %p2721_p4 }
  0x77   : > { %2729 = shalt.err (!%p2726_p12)
}
  0x78   : > { %s2730_s28 = scalar_lea.vmem %s3025_s12, 1024  ;;  %s2824_s18 = smov [#allocation8]  }
  0x79   : > { %p2731_p13 = scmp.ne.s32.totalorder %s3025_s12, %s2730_s28  ;;  %s2735_s24 = sshll.u32 %s2824_s18, 4  ;;  %s2736_s24 = int_to_ptr.vmem [resolvable:$false] %s2735_s24 }
  0x7a   : > { %s2737_s20 = scalar_lea.vmem %s2736_s24, 2048  ;;  %p2738_p0 = scmp.lt.s32.totalorder %s3025_s12, %s2736_s24 }
  0x7b   : > { %p2733_p5 = pnand %p2731_p13, %p2931_p10  ;;  %p2739_p1 = scmp.lt.s32.totalorder %s2737_s20, %s2730_s28 }
  0x7d   : > { %p2734_p7 = pneg %p2733_p5  ;;  %p2740_p2 = por %p2739_p1, %p2738_p0 }
  0x7f   : > { %p2741_p3 = pnand %p2740_p2, %p2734_p7 }
  0x81   : > { %2744 = shalt.err (!%p2741_p3)
}
  0x82   : > { %s2825_s27 = smov 64   ;;  %s2826_s29 = smov 4  }
  0x83   : > { %2574 = dma.hbm_to_vmem [thread:$0]  (!%p2911_p8), %s3021_s14, 1024, %s3025_s12, %s299_s13, %s2825_s27, %s2825_s27, %s2826_s29  }
  0x84   : > { %p3712_p10 = scmp.ne.s32.totalorder %s3710_s21, 0 }
  0x85   : > { %s323_s19 = sand.u32 (!%p3712_p10), 1, %s2807_s22   ;;  %p3713_p4 = scmp.ne.s32.totalorder (!%p3712_p10), %s3706_s30, 0 }
  0x86   : > { %321 = sbr.rel (%p3712_p10) target bundleno = 1360 (0x550), region = 44  ;;  %s2384_s9 = sshll.u32 (!%p3712_p10), %s323_s19, 10 }
  0x87   : > { %s324_s10 = scalar_lea.sflag (!%p3712_p10), [#allocation3], %s323_s19  ;;  %s3053_s16 = scalar_lea.vmem (!%p3712_p10), [#allocation2], %s2384_s9 }
  0x8b   : > { %2786 = dma.done.wait (%p3713_p4), %s324_s10, 16384  }
  0x8c   : > { %2788 = vsyncadd (%p3713_p4), %s324_s10, 4294950912  ;;  %s332_s8 = sand.u32 1, %s2885_s25   ;;  %s2385_s7 = sshll.u32 %s323_s19, 7 }
  0x8d   : > { %s333_s14 = scalar_lea.sflag [#allocation6], %s332_s8  ;;  %s3060_s12 = scalar_lea.vmem [#allocation5], %s2385_s7 }
  0x8e   : > { %2790 = dma.done.wait (%p3713_p4), %s333_s14, 2496  }
  0x8f   : > { %2792 = vsyncadd (%p3713_p4), %s333_s14, 4294964800  ;;  %s2548_s21 = smul.u32 28, %s323_s19  ;;  %s2386_s13 = sshll.u32 %s323_s19, 6 }
  0x90   : > { %s351_s17 = scalar_lea.sflag [#allocation9], %s323_s19  ;;  %s3068_s11 = scalar_lea.vmem [#allocation8], %s2386_s13 }
  0x91   : > { %s3066_s2 = scalar_lea.vmem [#allocation7], %s2548_s21 }
  0x92   : > { %2794 = dma.done.wait (%p3713_p4), %s351_s17, 1024  }
  0x93   : > { %2796 = vsyncadd (%p3713_p4), %s351_s17, 4294966272  ;;  %p403_p8 = scmp.lt.s32.totalorder %s2885_s25, 1  ;;  %vm462_vm0 = vcmask 523264   ;;  %vm524_vm1 = vcmask 519168   ;;  %vm556_vm2 = vcmask 1041408   ;;  %vm627_vm3 = vcmask 1043456  }
  0x94   : > { %vm690_vm4 = vcmask 1041409   ;;  %s2827_s19 = smov 64   ;;  %vm2829_vm5 = vmmov 0   ;;  %p2404_p6 = scmp.ne.s32.totalorder %s2885_s25, 0 }
  0x95   : > { %s3076_s3 = scalar_select %p403_p8, %s2885_s25, 1 }
  0x97   : > { %s2549_s15 = smul.u32 96, %s3076_s3  ;;  %s2413_s30 = sshll.u32 %s3076_s3, 9 }
  0x98   : > { %s3208_s29 = scalar_lea.vmem %s3695_s1, %s2413_s30 }
  0x99   : > { %s3082_s24 = scalar_lea.vmem %s3694_s0, %s2549_s15 }
  0x9a   : > { %v2415_v0 = vld [vmem:[%s3082_s24] sm:$0xff]   ;;  %v2462_v1 = vld [vmem:[%s3082_s24 + $0x8] sm:$0xff]   ;;  %v3087_v2 = vld [vmem:[%s3082_s24 + $0x10] sm:$0xff]  }
  0x9b   : > { %v2467_v3 = vld [vmem:[%s3082_s24 + $0x30] sm:$0xff]   ;;  %v2468_v4 = vld [vmem:[%s3082_s24 + $0x38] sm:$0xff]   ;;  %v2416_v5 = vunpack.c.l.bf16 %v2415_v0  ;;  %v2417_v6 = vunpack.c.h.bf16 %v2415_v0  ;;  %v2420_v7 = vunpack.c.l.bf16 %v2462_v1  ;;  %v3095_v9 = vld [vmem:[%s3082_s24 + $0x20] sm:$0xff]   ;;  %v2421_v11 = vunpack.c.h.bf16 %v2462_v1 }
  0x9c   : > { %v3092_v8 = vld [vmem:[%s3082_s24 + $0x18] sm:$0xff]   ;;  %v3098_v10 = vld [vmem:[%s3082_s24 + $0x28] sm:$0xff]   ;;  %v3101_v12 = vunpack.c.l.bf16 %v3087_v2  ;;  %v2425_v13 = vunpack.c.h.bf16 %v3087_v2  ;;  %v2440_v15 = vunpack.c.l.bf16 %v2467_v3  ;;  %v2441_v16 = vunpack.c.h.bf16 %v2467_v3  ;;  %v3106_v18 = vld [vmem:[%s3082_s24 + $0x40] sm:$0xff]  }
  0x9d   : > { %v2428_v14 = vunpack.c.l.bf16 %v3092_v8  ;;  %v2444_v17 = vunpack.c.l.bf16 %v2468_v4  ;;  %v3109_v19 = vunpack.c.h.bf16 %v3092_v8  ;;  %v3112_v20 = vunpack.c.l.bf16 %v3095_v9  ;;  %v3117_v24 = vld [vmem:[%s3082_s24 + $0x48] sm:$0xff]   ;;  %v3128_v31 = vld [vmem:[%s3082_s24 + $0x50] sm:$0xff]   ;;  %v3131_v33 = vld [vmem:[%s3082_s24 + $0x58] sm:$0xff]  }
  0x9e   : > { %v2433_v21 = vunpack.c.h.bf16 %v3095_v9  ;;  %v2436_v22 = vunpack.c.l.bf16 %v3098_v10  ;;  %v2445_v23 = vunpack.c.h.bf16 %v2468_v4  ;;  %v463_v25 = vsel %vm462_vm0, %v2416_v5, 0.0  ;;  %v3259_v8 = vld [vmem:[%s3208_s29] sm:$0xff] }
  0x9f   : > { %v464_v26 = vsel %vm462_vm0, %v2417_v6, 0.0  ;;  %v466_v27 = vsel %vm462_vm0, %v2420_v7, 0.0  ;;  %v2437_v28 = vunpack.c.h.bf16 %v3098_v10  ;;  %v3124_v29 = vunpack.c.l.bf16 %v3106_v18 }
  0xa0   : > { %v2449_v30 = vunpack.c.h.bf16 %v3106_v18  ;;  %v465_v32 = vadd.f32 %v464_v26, %v463_v25  ;;  %v468_v34 = vsel %vm462_vm0, %v2421_v11, 0.0  ;;  %v492_v35 = vsel %vm462_vm0, %v2440_v15, 0.0 }
  0xa1   : > { %v493_v36 = vsel %vm462_vm0, %v2441_v16, 0.0  ;;  %v495_v37 = vsel %vm462_vm0, %v2444_v17, 0.0  ;;  %v2452_v38 = vunpack.c.l.bf16 %v3117_v24  ;;  %v3139_v39 = vunpack.c.h.bf16 %v3117_v24 }
  0xa2   : > { %v467_v40 = vadd.f32 %v466_v27, %v465_v32  ;;  %v494_v41 = vadd.f32 %v493_v36, %v492_v35  ;;  %v3142_v42 = vunpack.c.l.bf16 %v3128_v31  ;;  %v2457_v43 = vunpack.c.h.bf16 %v3128_v31 }
  0xa3   : > { %v497_v44 = vsel %vm462_vm0, %v2445_v23, 0.0  ;;  %v525_v45 = vsel %vm524_vm1, %v3101_v12, 0.0  ;;  %v2460_v46 = vunpack.c.l.bf16 %v3131_v33  ;;  %v557_v49 = vrot.slane %v2421_v11, 6 }
  0xa4   : > { %v3149_v47 = vadd.f32 %v468_v34, %v467_v40  ;;  %v496_v48 = vadd.f32 %v495_v37, %v494_v41  ;;  %v499_v50 = vsel %vm462_vm0, %v3124_v29, 0.0  ;;  %v533_v51 = vsel %vm524_vm1, %v3124_v29, 0.0 }
  0xa5   : > { %v558_v52 = vrot.slane %v3101_v12, 6  ;;  %v568_v53 = vrot.slane %v2445_v23, 6  ;;  %v2461_v54 = vunpack.c.h.bf16 %v3131_v33  ;;  %v569_v57 = vrot.slane %v3124_v29, 6 }
  0xa6   : > { %v498_v55 = vadd.f32 %v497_v44, %v496_v48  ;;  %v526_v56 = vadd.f32 %v525_v45, %v3149_v47  ;;  %v501_v58 = vsel %vm462_vm0, %v2449_v30, 0.0  ;;  %v628_v60 = vrot.slane %v3109_v19, 4 }
  0xa7   : > { %v3165_v59 = vsel %vm556_vm2, %v557_v49, %v558_v52  ;;  %v629_v61 = vrot.slane %v3112_v20, 4  ;;  %v3172_v1 = vsel %vm556_vm2, %v568_v53, %v569_v57  ;;  %v503_v3 = vsel %vm462_vm0, %v2452_v38, 0.0 }
  0xa8   : > { %v500_v62 = vadd.f32 %v499_v50, %v498_v55  ;;  %v527_v63 = vrot.slane %v526_v56, 4  ;;  %v534_v0 = vadd.f32 %v533_v51, %v498_v55  ;;  %v631_v4 = vrot.slane %v2433_v21, 4 }
  0xa9   : > { %v633_v5 = vrot.slane %v2436_v22, 4  ;;  %v635_v6 = vrot.slane %v2437_v28, 4  ;;  %v630_v15 = vsel %vm627_vm3, %v628_v60, %v629_v61  ;;  %v637_v16 = vrot.slane %v3139_v39, 4 }
  0xaa   : > { %v502_v7 = vadd.f32 %v501_v58, %v500_v62  ;;  %v535_v11 = vrot.slane %v534_v0, 4  ;;  %v505_v17 = vsel %vm462_vm0, %v3139_v39, 0.0  ;;  %v528_v23 = vadd.f32 %v527_v63, %v526_v56 }
  0xab   : > { %v632_v25 = vsel %vm627_vm3, %v629_v61, %v631_v4  ;;  %v638_v26 = vrot.slane %v3142_v42, 4  ;;  %v634_v34 = vsel %vm627_vm3, %v631_v4, %v633_v5  ;;  %v640_v35 = vrot.slane %v2457_v43, 4 }
  0xac   : > { %v504_v27 = vadd.f32 %v503_v3, %v502_v7  ;;  %v536_v32 = vadd.f32 %v535_v11, %v534_v0  ;;  %v470_v36 = vsel %vm462_vm0, %v3101_v12, 0.0  ;;  %v642_v37 = vrot.slane %v2460_v46, 4  ;;  %v748_v11 = vld [vmem:[%s3208_s29 + $0xc8] sm:$0xff] }
  0xad   : > { %v644_v40 = vrot.slane %v2461_v54, 4  ;;  %v656_v41 = vsel %vm462_vm0, %v630_v15, 0.0  ;;  %v636_v45 = vsel %vm627_vm3, %v633_v5, %v635_v6  ;;  %v639_v48 = vsel %vm627_vm3, %v637_v16, %v638_v26  ;;  %v750_v15 = vld [vmem:[%s3208_s29 + $0xd8] sm:$0xff] }
  0xae   : > { %v3200_v44 = vadd.f32 %v505_v17, %v504_v27  ;;  %v641_v49 = vsel %vm627_vm3, %v638_v26, %v640_v35  ;;  %v643_v50 = vsel %vm627_vm3, %v640_v35, %v642_v37  ;;  %v657_v51 = vsel %vm462_vm0, %v632_v25, 0.0 }
  0xaf   : > { %v659_v53 = vsel %vm462_vm0, %v634_v34, 0.0  ;;  %v529_v55 = vrot.slane %v528_v23, 2  ;;  %v537_v56 = vrot.slane %v536_v32, 2  ;;  %v645_v58 = vsel %vm627_vm3, %v642_v37, %v644_v40 }
  0xb0   : > { %v658_v60 = vadd.f32 %v657_v51, %v656_v41  ;;  %v661_v61 = vsel %vm462_vm0, %v636_v45, 0.0  ;;  %v671_v62 = vsel %vm462_vm0, %v639_v48, 0.0  ;;  %v672_v63 = vsel %vm462_vm0, %v641_v49, 0.0  ;;  %v747_v41 = vld [vmem:[%s3208_s29 + $0xc0] sm:$0xff]  ;;  %v749_v45 = vld [vmem:[%s3208_s29 + $0xd0] sm:$0xff] }
  0xb1   : > { %v674_v0 = vsel %vm462_vm0, %v643_v50, 0.0  ;;  %v472_v3 = vsel %vm462_vm0, %v2425_v13, 0.0  ;;  %v474_v4 = vsel %vm462_vm0, %v2428_v14, 0.0  ;;  %v673_v7 = vadd.f32 %v672_v63, %v671_v62 }
  0xb2   : > { %v660_v5 = vadd.f32 %v659_v53, %v658_v60  ;;  %v476_v16 = vsel %vm462_vm0, %v3109_v19, 0.0  ;;  %v663_v17 = vsel %vm524_vm1, %v635_v6, 0.0  ;;  %v676_v25 = vsel %vm462_vm0, %v645_v58, 0.0 }
  0xb3   : > { %v471_v26 = vadd.f32 %v470_v36, %v3149_v47  ;;  %v530_v27 = vadd.f32 %v529_v55, %v528_v23  ;;  %v538_v34 = vadd.f32 %v537_v56, %v536_v32  ;;  %v675_v37 = vadd.f32 %v674_v0, %v673_v7  ;;  %v740_v32 = vld [vmem:[%s3208_s29 + $0x88] sm:$0xff]  ;;  %v742_v36 = vld [vmem:[%s3208_s29 + $0x98] sm:$0xff] }
  0xb4   : > { %v662_v35 = vadd.f32 %v661_v61, %v660_v5  ;;  %v678_v48 = vsel %vm524_vm1, %v644_v40, 0.0  ;;  %v844_v50 = vunpack.c.h.s8.bf16 %v748_v11  ;;  %v846_v51 = vunpack.c.h.s8.bf16 %v750_v15 }
  0xb5   : > { %v473_v49 = vadd.f32 %v472_v3, %v471_v26  ;;  %v677_v60 = vadd.f32 %v676_v25, %v675_v37  ;;  %v836_v6 = vunpack.c.l.s8.bf16 %v748_v11  ;;  %v838_v62 = vunpack.c.l.s8.bf16 %v750_v15  ;;  %v739_v15 = vld [vmem:[%s3208_s29 + $0x80] sm:$0xff] }
  0xb6   : > { %v664_v53 = vadd.f32 %v663_v17, %v662_v35  ;;  %915 = vmatprep.subr.bf16.mxu0 %v844_v50  ;;  %956 = vmatprep.subr.bf16.mxu1 %v846_v51  ;;  %v843_v47 = vunpack.c.h.s8.bf16 %v747_v41  ;;  %v845_v23 = vunpack.c.h.s8.bf16 %v749_v45  ;;  %v531_v55 = vrot.slane %v530_v27, 1  ;;  %v741_v17 = vld [vmem:[%s3208_s29 + $0x90] sm:$0xff]  ;;  %v732_v51 = vld [vmem:[%s3208_s29 + $0x48] sm:$0xff] }
  0xb7   : > { %v475_v58 = vadd.f32 %v474_v4, %v473_v49  ;;  %v679_v61 = vadd.f32 %v678_v48, %v677_v60  ;;  %v539_v40 = vrot.slane %v538_v34, 1  ;;  %v835_v0 = vunpack.c.l.s8.bf16 %v747_v41 }
  0xb8   : > { %v665_v56 = vrot.slane %v664_v53, 4  ;;  %916 = vmatpush1.bf16.msra.mxu0 %v843_v47  ;;  %v837_v3 = vunpack.c.l.s8.bf16 %v749_v45  ;;  %957 = vmatpush1.bf16.msra.mxu1 %v845_v23  ;;  %v828_v7 = vunpack.c.h.s8.bf16 %v740_v32  ;;  %v830_v11 = vunpack.c.h.s8.bf16 %v742_v36 }
  0xb9   : > { %v3236_v63 = vadd.f32 %v476_v16, %v475_v58  ;;  %v680_v4 = vrot.slane %v679_v61, 4  ;;  %917 = vmatprep.subr.bf16.mxu0 %v836_v6  ;;  %958 = vmatprep.subr.bf16.mxu1 %v838_v62  ;;  %v532_v35 = vadd.f32 %v531_v55, %v530_v27  ;;  %v540_v37 = vadd.f32 %v539_v40, %v538_v34  ;;  %v731_v55 = vld [vmem:[%s3208_s29 + $0x40] sm:$0xff] }
  0xba   : > { %v666_v5 = vadd.f32 %v665_v56, %v664_v53  ;;  %v827_v16 = vunpack.c.h.s8.bf16 %v739_v15  ;;  %v829_v41 = vunpack.c.h.s8.bf16 %v741_v17  ;;  %v820_v49 = vunpack.c.l.s8.bf16 %v740_v32  ;;  %v734_v53 = vld [vmem:[%s3208_s29 + $0x58] sm:$0xff]  ;;  %v733_v56 = vld [vmem:[%s3208_s29 + $0x50] sm:$0xff] }
  0xbb   : > { %v681_v26 = vadd.f32 %v680_v4, %v679_v61  ;;  %v822_v50 = vunpack.c.l.s8.bf16 %v742_v36  ;;  %v542_v62 = vmul.f32 0.027777778, %v532_v35  ;;  %v543_v58 = vmul.f32 0.027777778, %v540_v37  ;;  %v3252_v4 = vld [vmem:[%s3208_s29 + $0x18] sm:$0xff]  ;;  %v3268_v35 = vld [vmem:[%s3208_s29 + $0x1c8] sm:$0xff] }
  0xbc   : > { %v667_v25 = vrot.slane %v666_v5, 2  ;;  %918 = vmatpush1.bf16.msra.mxu0 %v835_v0  ;;  %959 = vmatpush1.bf16.msra.mxu1 %v837_v3  ;;  %v819_v27 = vunpack.c.l.s8.bf16 %v739_v15  ;;  %v821_v34 = vunpack.c.l.s8.bf16 %v741_v17  ;;  %v812_v32 = vunpack.c.h.s8.bf16 %v732_v51  ;;  %v3271_v37 = vld [vmem:[%s3208_s29 + $0x1d8] sm:$0xff] }
  0xbd   : > { %v682_v48 = vrot.slane %v681_v26, 2  ;;  %919 = vmatprep.subr.bf16.mxu0 %v828_v7  ;;  %960 = vmatprep.subr.bf16.mxu1 %v830_v11  ;;  %v814_v36 = vunpack.c.h.s8.bf16 %v734_v53  ;;  %v560_v61 = vrot.slane %v2425_v13, 6  ;;  %v562_v40 = vrot.slane %v2428_v14, 6  ;;  %v3262_v14 = vld [vmem:[%s3208_s29 + $0x10] sm:$0xff] }
  0xbe   : > { %v668_v45 = vadd.f32 %v667_v25, %v666_v5  ;;  %v3249_v5 = vld [vmem:[%s3208_s29 + $0x8] sm:$0xff]  ;;  %v571_v7 = vrot.slane %v2449_v30, 6  ;;  %v573_v11 = vrot.slane %v2452_v38, 6  ;;  %v811_v2 = vunpack.c.h.s8.bf16 %v731_v55 }
  0xbf   : > { %v683_v6 = vadd.f32 %v682_v48, %v681_v26  ;;  %v813_v13 = vunpack.c.h.s8.bf16 %v733_v56  ;;  %v695_v17 = vsel %vm690_vm4, %v543_v58, %v542_v62  ;;  %v804_v18 = vunpack.c.l.s8.bf16 %v732_v51 }
  0xc0   : > { %v669_v60 = vrot.slane %v668_v45, 1  ;;  %920 = vmatpush1.bf16.msra.mxu0 %v827_v16  ;;  %961 = vmatpush1.bf16.msra.mxu1 %v829_v41  ;;  %v806_v30 = vunpack.c.l.s8.bf16 %v734_v53  ;;  %v803_v25 = vunpack.c.l.s8.bf16 %v731_v55  ;;  %v805_v24 = vunpack.c.l.s8.bf16 %v733_v56 }
  0xc1   : > { %v684_v23 = vrot.slane %v683_v6, 1  ;;  %921 = vmatprep.subr.bf16.mxu0 %v820_v49  ;;  %962 = vmatprep.subr.bf16.mxu1 %v822_v50  ;;  %v796_v38 = vunpack.c.h.s8.bf16 %v3249_v5  ;;  %v798_v26 = vunpack.c.h.s8.bf16 %v3252_v4  ;;  %v795_v41 = vunpack.c.h.s8.bf16 %v3259_v8 }
  0xc2   : > { %v670_v47 = vadd.f32 %v669_v60, %v668_v45  ;;  %v797_v45 = vunpack.c.h.s8.bf16 %v3262_v14  ;;  %v788_v48 = vunpack.c.l.s8.bf16 %v3249_v5  ;;  %v790_v50 = vunpack.c.l.s8.bf16 %v3252_v4 }
  0xc3   : > { %v685_v0 = vadd.f32 %v684_v23, %v683_v6  ;;  %v787_v51 = vunpack.c.l.s8.bf16 %v3259_v8  ;;  %v789_v53 = vunpack.c.l.s8.bf16 %v3262_v14  ;;  %v908_v60 = vunpack.c.h.s8.bf16 %v3268_v35 }
  0xc4   : > { %v686_v3 = vmul.f32 0.027777778, %v670_v47  ;;  %922 = vmatpush1.bf16.msra.mxu0 %v819_v27  ;;  %963 = vmatpush1.bf16.msra.mxu1 %v821_v34  ;;  %v910_v6 = vunpack.c.h.s8.bf16 %v3271_v37  ;;  %v478_v62 = vsel %vm462_vm0, %v3112_v20, 0.0  ;;  %v507_v58 = vsel %vm462_vm0, %v3142_v42, 0.0 }
  0xc5   : > { %v687_v15 = vmul.f32 0.027777778, %v685_v0  ;;  %923 = vmatprep.subr.bf16.mxu0 %v812_v32  ;;  %964 = vmatprep.subr.bf16.mxu1 %v814_v36  ;;  %v508_v27 = vadd.f32 %v507_v58, %v3200_v44  ;;  %v509_v34 = vsel %vm462_vm0, %v2457_v43, 0.0  ;;  %v511_v47 = vsel %vm462_vm0, %v2460_v46, 0.0 }
  0xc6   : > { %v513_v23 = vsel %vm462_vm0, %v2461_v54, 0.0  ;;  %v561_v32 = vsel %vm556_vm2, %v558_v52, %v560_v61  ;;  %v563_v36 = vsel %vm556_vm2, %v560_v61, %v562_v40  ;;  %v564_v44 = vrot.slane %v3109_v19, 6 }
  0xc7   : > { %v705_v16 = vsel %vm690_vm4, %v687_v15, %v686_v3  ;;  %v566_v31 = vrot.slane %v3112_v20, 6  ;;  %v510_v43 = vadd.f32 %v509_v34, %v508_v27  ;;  %v572_v46 = vsel %vm556_vm2, %v569_v57, %v571_v7 }
  0xc8   : > { %v2620_v49 = vpack.i.bf16 %v695_v17, %v705_v16  ;;  %924 = vmatpush1.bf16.msra.mxu0 %v811_v2  ;;  %965 = vmatpush1.bf16.msra.mxu1 %v813_v13  ;;  %v574_v33 = vsel %vm556_vm2, %v571_v7, %v573_v11  ;;  %v575_v54 = vrot.slane %v3139_v39, 6  ;;  %v565_v12 = vsel %vm556_vm2, %v562_v40, %v564_v44  ;;  %v781_v7 = vld [vmem:[%s3208_s29 + $0x1d0] sm:$0xff] }
  0xc9   : > { %925 = vmatprep.subr.bf16.mxu0 %v804_v18  ;;  %966 = vmatprep.subr.bf16.mxu1 %v806_v30  ;;  %v567_v19 = vsel %vm556_vm2, %v564_v44, %v566_v31  ;;  %v577_v20 = vrot.slane %v3142_v42, 6  ;;  %v589_v52 = vsel %vm462_vm0, %v3165_v59, 0.0  ;;  %v512_v55 = vadd.f32 %v511_v47, %v510_v43  ;;  %v779_v42 = vld [vmem:[%s3208_s29 + $0x1c0] sm:$0xff] }
  0xca   : > { %2621 = vrot.lane.b32.xlu0 %v2620_v49, %s2827_s19  ;;  %v576_v29 = vsel %vm556_vm2, %v573_v11, %v575_v54  ;;  %v590_v57 = vsel %vm462_vm0, %v561_v32, 0.0  ;;  %v592_v39 = vsel %vm462_vm0, %v563_v36, 0.0  ;;  %v594_v40 = vsel %vm462_vm0, %v565_v12, 0.0  ;;  %v764_v12 = vld [vmem:[%s3208_s29 + $0x148] sm:$0xff] }
  0xcb   : > { %v578_v56 = vsel %vm556_vm2, %v575_v54, %v577_v20  ;;  %v591_v61 = vadd.f32 %v590_v57, %v589_v52  ;;  %v596_v0 = vsel %vm524_vm1, %v567_v19, 0.0  ;;  %v514_v3 = vadd.f32 %v513_v23, %v512_v55  ;;  %v766_v19 = vld [vmem:[%s3208_s29 + $0x158] sm:$0xff] }
  0xcc   : > { %926 = vmatpush1.bf16.msra.mxu0 %v803_v25  ;;  %967 = vmatpush1.bf16.msra.mxu1 %v805_v24  ;;  %v604_v59 = vsel %vm462_vm0, %v3172_v1, 0.0  ;;  %v605_v5 = vsel %vm462_vm0, %v572_v46, 0.0  ;;  %v607_v4 = vsel %vm462_vm0, %v574_v33, 0.0  ;;  %v480_v11 = vsel %vm462_vm0, %v2433_v21, 0.0 }
  0xcd   : > { %927 = vmatprep.subr.bf16.mxu0 %v796_v38  ;;  %968 = vmatprep.subr.bf16.mxu1 %v798_v26  ;;  %v593_v2 = vadd.f32 %v592_v39, %v591_v61  ;;  %v606_v13 = vadd.f32 %v605_v5, %v604_v59  ;;  %v611_v8 = vsel %vm524_vm1, %v578_v56, 0.0  ;;  %v515_v14 = vrot.slane %v514_v3, 4 }
  0xce   : > { %v609_v15 = vsel %vm462_vm0, %v576_v29, 0.0  ;;  %v479_v1 = vadd.f32 %v478_v62, %v3236_v63  ;;  %v907_v17 = vunpack.c.h.s8.bf16 %v779_v42  ;;  %v482_v18 = vsel %vm462_vm0, %v2436_v22, 0.0  ;;  %v773_v62 = vld [vmem:[%s3208_s29 + $0x190] sm:$0xff] }
  0xcf   : > { %v595_v30 = vadd.f32 %v594_v40, %v593_v2  ;;  %v608_v9 = vadd.f32 %v607_v4, %v606_v13  ;;  %v909_v21 = vunpack.c.h.s8.bf16 %v781_v7  ;;  %v900_v25 = vunpack.c.l.s8.bf16 %v3268_v35 }
  0xd0   : > { %928 = vmatpush1.bf16.msra.mxu0 %v795_v41  ;;  %969 = vmatpush1.bf16.msra.mxu1 %v797_v45  ;;  %v516_v24 = vadd.f32 %v515_v14, %v514_v3  ;;  %v481_v38 = vadd.f32 %v480_v11, %v479_v1  ;;  %v902_v63 = vunpack.c.l.s8.bf16 %v3271_v37  ;;  %v484_v26 = vsel %vm462_vm0, %v2437_v28, 0.0  ;;  %v772_v41 = vld [vmem:[%s3208_s29 + $0x188] sm:$0xff]  ;;  %v774_v45 = vld [vmem:[%s3208_s29 + $0x198] sm:$0xff] }
  0xd1   : > { %929 = vmatprep.subr.bf16.mxu0 %v788_v48  ;;  %970 = vmatprep.subr.bf16.mxu1 %v790_v50  ;;  %v597_v16 = vadd.f32 %v596_v0, %v595_v30  ;;  %v610_v22 = vadd.f32 %v609_v15, %v608_v9  ;;  %v892_v10 = vunpack.c.h.s8.bf16 %v772_v41  ;;  %v894_v28 = vunpack.c.h.s8.bf16 %v774_v45  ;;  %v763_v0 = vld [vmem:[%s3208_s29 + $0x140] sm:$0xff] }
  0xd2   : > { %v517_v48 = vrot.slane %v516_v24, 2  ;;  %v483_v49 = vadd.f32 %v482_v18, %v481_v38  ;;  %v893_v36 = vunpack.c.h.s8.bf16 %v773_v62  ;;  %v884_v43 = vunpack.c.l.s8.bf16 %v772_v41  ;;  %v758_v18 = vld [vmem:[%s3208_s29 + $0x118] sm:$0xff] }
  0xd3   : > { %v598_v50 = vrot.slane %v597_v16, 4  ;;  %v612_v35 = vadd.f32 %v611_v8, %v610_v22  ;;  %v886_v46 = vunpack.c.l.s8.bf16 %v774_v45  ;;  %v885_v57 = vunpack.c.l.s8.bf16 %v773_v62  ;;  %v753_v62 = vld [vmem:[%s3208_s29 + $0xf0] sm:$0xff] }
  0xd4   : > { %930 = vmatpush1.bf16.msra.mxu0 %v787_v51  ;;  %971 = vmatpush1.bf16.msra.mxu1 %v789_v53  ;;  %v899_v51 = vunpack.c.l.s8.bf16 %v779_v42  ;;  %v901_v53 = vunpack.c.l.s8.bf16 %v781_v7  ;;  %v485_v37 = vadd.f32 %v484_v26, %v483_v49  ;;  %v876_v61 = vunpack.c.h.s8.bf16 %v764_v12  ;;  %v765_v42 = vld [vmem:[%s3208_s29 + $0x150] sm:$0xff]  ;;  %v755_v26 = vld [vmem:[%s3208_s29 + $0x100] sm:$0xff]  ;;  %v752_v49 = vld [vmem:[%s3208_s29 + $0xe8] sm:$0xff] }
  0xd5   : > { %931 = vmatprep.subr.bf16.mxu0 %v908_v60  ;;  %972 = vmatprep.subr.bf16.mxu1 %v910_v6  ;;  %v518_v60 = vadd.f32 %v517_v48, %v516_v24  ;;  %v771_v6 = vld [vmem:[%s3208_s29 + $0x180] sm:$0xff]  ;;  %v599_v58 = vadd.f32 %v598_v50, %v597_v16  ;;  %v613_v27 = vrot.slane %v612_v35, 4  ;;  %v878_v40 = vunpack.c.h.s8.bf16 %v766_v19  ;;  %v757_v16 = vld [vmem:[%s3208_s29 + $0x110] sm:$0xff]  ;;  %v754_v50 = vld [vmem:[%s3208_s29 + $0xf8] sm:$0xff] }
  0xd6   : > { %v486_v34 = vrot.slane %v485_v37, 4  ;;  %v891_v32 = vunpack.c.h.s8.bf16 %v771_v6  ;;  %v883_v29 = vunpack.c.l.s8.bf16 %v771_v6  ;;  %v875_v11 = vunpack.c.h.s8.bf16 %v763_v0  ;;  %v751_v6 = vld [vmem:[%s3208_s29 + $0xe0] sm:$0xff] }
  0xd7   : > { %v600_v47 = vrot.slane %v599_v58, 2  ;;  %v614_v23 = vadd.f32 %v613_v27, %v612_v35  ;;  %v519_v44 = vrot.slane %v518_v60, 1  ;;  %v877_v2 = vunpack.c.h.s8.bf16 %v765_v42 }
  0xd8   : > { %932 = vmatpush2.bf16.msra.mxu0 %v907_v17  ;;  %973 = vmatpush2.bf16.msra.mxu1 %v909_v21  ;;  %v487_v31 = vadd.f32 %v486_v34, %v485_v37  ;;  %v868_v14 = vunpack.c.l.s8.bf16 %v764_v12  ;;  %v870_v15 = vunpack.c.l.s8.bf16 %v766_v19  ;;  %v756_v17 = vld [vmem:[%s3208_s29 + $0x108] sm:$0xff]  ;;  %v867_v21 = vunpack.c.l.s8.bf16 %v763_v0  ;;  %v743_v19 = vld [vmem:[%s3208_s29 + $0xa0] sm:$0xff] }
  0xd9   : > { %933 = vmatprep.subr.bf16.mxu0 %v900_v25  ;;  %974 = vmatprep.subr.bf16.mxu1 %v902_v63  ;;  %v601_v33 = vadd.f32 %v600_v47, %v599_v58  ;;  %v615_v54 = vrot.slane %v614_v23, 2  ;;  %v520_v39 = vadd.f32 %v519_v44, %v518_v60  ;;  %v869_v25 = vunpack.c.l.s8.bf16 %v765_v42 }
  0xda   : > { %v488_v20 = vrot.slane %v487_v31, 2  ;;  %v860_v38 = vunpack.c.h.s8.bf16 %v756_v17  ;;  %v862_v63 = vunpack.c.h.s8.bf16 %v758_v18  ;;  %v859_v22 = vunpack.c.h.s8.bf16 %v755_v26 }
  0xdb   : > { %v602_v52 = vrot.slane %v601_v33, 1  ;;  %v616_v55 = vadd.f32 %v615_v54, %v614_v23  ;;  %v523_v13 = vmul.f32 0.010416667, %v520_v39  ;;  %v861_v41 = vunpack.c.h.s8.bf16 %v757_v16  ;;  %v736_v39 = vld [vmem:[%s3208_s29 + $0x68] sm:$0xff] }
  0xdc   : > { %934 = vmatpush2.bf16.msra.mxu0 %v899_v51  ;;  %975 = vmatpush2.bf16.msra.mxu1 %v901_v53  ;;  %v489_v56 = vadd.f32 %v488_v20, %v487_v31  ;;  %v852_v45 = vunpack.c.l.s8.bf16 %v756_v17  ;;  %v854_v48 = vunpack.c.l.s8.bf16 %v758_v18  ;;  %v851_v35 = vunpack.c.l.s8.bf16 %v755_v26  ;;  %v744_v31 = vld [vmem:[%s3208_s29 + $0xa8] sm:$0xff]  ;;  %v745_v20 = vld [vmem:[%s3208_s29 + $0xb0] sm:$0xff]  ;;  %v727_v17 = vld [vmem:[%s3208_s29 + $0x20] sm:$0xff] }
  0xdd   : > { %935 = vmatprep.subr.bf16.mxu0 %v892_v10  ;;  %976 = vmatprep.subr.bf16.mxu1 %v894_v28  ;;  %v603_v3 = vadd.f32 %v602_v52, %v601_v33  ;;  %v617_v59 = vrot.slane %v616_v55, 1  ;;  %v853_v51 = vunpack.c.l.s8.bf16 %v757_v16  ;;  %v848_v53 = vunpack.c.h.s8.bf16 %v752_v49  ;;  %v729_v18 = vld [vmem:[%s3208_s29 + $0x30] sm:$0xff] }
  0xde   : > { %v490_v5 = vrot.slane %v489_v56, 1  ;;  %v850_v60 = vunpack.c.h.s8.bf16 %v754_v50  ;;  %v847_v23 = vunpack.c.h.s8.bf16 %v751_v6  ;;  %v842_v44 = vunpack.c.l.s8.bf16 %v754_v50 }
  0xdf   : > { %v618_v4 = vadd.f32 %v617_v59, %v616_v55  ;;  %v619_v7 = vmul.f32 0.027777778, %v603_v3  ;;  %v841_v33 = vunpack.c.l.s8.bf16 %v753_v62  ;;  %v832_v54 = vunpack.c.h.s8.bf16 %v744_v31  ;;  %v735_v3 = vld [vmem:[%s3208_s29 + $0x60] sm:$0xff]  ;;  %v737_v59 = vld [vmem:[%s3208_s29 + $0x70] sm:$0xff] }
  0xe0   : > { %936 = vmatpush2.bf16.msra.mxu0 %v891_v32  ;;  %977 = vmatpush2.bf16.msra.mxu1 %v893_v36  ;;  %v491_v8 = vadd.f32 %v490_v5, %v489_v56  ;;  %v849_v32 = vunpack.c.h.s8.bf16 %v753_v62  ;;  %v840_v36 = vunpack.c.l.s8.bf16 %v752_v49  ;;  %v831_v52 = vunpack.c.h.s8.bf16 %v743_v19  ;;  %v738_v56 = vld [vmem:[%s3208_s29 + $0x78] sm:$0xff]  ;;  %v777_v62 = vld [vmem:[%s3208_s29 + $0x1b0] sm:$0xff] }
  0xe1   : > { %937 = vmatprep.subr.bf16.mxu0 %v884_v43  ;;  %978 = vmatprep.subr.bf16.mxu1 %v886_v46  ;;  %v620_v1 = vmul.f32 0.027777778, %v618_v4  ;;  %v746_v43 = vld [vmem:[%s3208_s29 + $0xb8] sm:$0xff]  ;;  %v839_v46 = vunpack.c.l.s8.bf16 %v751_v6  ;;  %v833_v55 = vunpack.c.h.s8.bf16 %v745_v20  ;;  %v816_v0 = vunpack.c.h.s8.bf16 %v736_v39  ;;  %v775_v6 = vld [vmem:[%s3208_s29 + $0x1a0] sm:$0xff] }
  0xe2   : > { %v522_v30 = vmul.f32 0.010416667, %v491_v8  ;;  %v834_v12 = vunpack.c.h.s8.bf16 %v746_v43  ;;  %v818_v42 = vunpack.c.h.s8.bf16 %v738_v56  ;;  %v815_v5 = vunpack.c.h.s8.bf16 %v735_v3 }
  0xe3   : > { %v701_v9 = vsel %vm690_vm4, %v620_v1, %v619_v7  ;;  %v817_v4 = vunpack.c.h.s8.bf16 %v737_v59  ;;  %v808_v7 = vunpack.c.l.s8.bf16 %v736_v39  ;;  %v807_v8 = vunpack.c.l.s8.bf16 %v735_v3 }
  0xe4   : > { %938 = vmatpush2.bf16.msra.mxu0 %v883_v29  ;;  %979 = vmatpush2.bf16.msra.mxu1 %v885_v57  ;;  %v691_v24 = vsel %vm690_vm4, %v523_v13, %v522_v30  ;;  %v824_v29 = vunpack.c.l.s8.bf16 %v744_v31  ;;  %v826_v57 = vunpack.c.l.s8.bf16 %v746_v43  ;;  %v730_v13 = vld [vmem:[%s3208_s29 + $0x38] sm:$0xff]  ;;  %v799_v30 = vunpack.c.h.s8.bf16 %v727_v17 }
  0xe5   : > { %939 = vmatprep.subr.bf16.mxu0 %v876_v61  ;;  %980 = vmatprep.subr.bf16.mxu1 %v878_v40  ;;  %v823_v61 = vunpack.c.l.s8.bf16 %v743_v19  ;;  %v825_v40 = vunpack.c.l.s8.bf16 %v745_v20  ;;  %v802_v1 = vunpack.c.h.s8.bf16 %v730_v13  ;;  %v793_v26 = vunpack.c.l.s8.bf16 %v729_v18 }
  0xe6   : > { %v889_v31 = vunpack.c.l.s8.bf16 %v777_v62 }
  0xe8   : > { %940 = vmatpush2.bf16.msra.mxu0 %v875_v11  ;;  %981 = vmatpush2.bf16.msra.mxu1 %v877_v2  ;;  %v810_v11 = vunpack.c.l.s8.bf16 %v738_v56  ;;  %v728_v2 = vld [vmem:[%s3208_s29 + $0x28] sm:$0xff] }
  0xe9   : > { %941 = vmatprep.subr.bf16.mxu0 %v868_v14  ;;  %982 = vmatprep.subr.bf16.mxu1 %v870_v15  ;;  %v809_v14 = vunpack.c.l.s8.bf16 %v737_v59  ;;  %v800_v15 = vunpack.c.h.s8.bf16 %v728_v2 }
  0xec   : > { %942 = vmatpush2.bf16.msra.mxu0 %v867_v21  ;;  %983 = vmatpush2.bf16.msra.mxu1 %v869_v25  ;;  %v792_v21 = vunpack.c.l.s8.bf16 %v728_v2  ;;  %v794_v25 = vunpack.c.l.s8.bf16 %v730_v13 }
  0xed   : > { %943 = vmatprep.subr.bf16.mxu0 %v860_v38  ;;  %984 = vmatprep.subr.bf16.mxu1 %v862_v63  ;;  %v786_v38 = vld [vmem:[%s3208_s29 + $0x1f8] sm:$0xff]  ;;  %v791_v63 = vunpack.c.l.s8.bf16 %v727_v17 }
  0xf0   : > { %944 = vmatpush2.bf16.msra.mxu0 %v859_v22  ;;  %985 = vmatpush2.bf16.msra.mxu1 %v861_v41  ;;  %v914_v22 = vunpack.c.h.s8.bf16 %v786_v38  ;;  %v783_v41 = vld [vmem:[%s3208_s29 + $0x1e0] sm:$0xff] }
  0xf1   : > { %945 = vmatprep.subr.bf16.mxu0 %v852_v45  ;;  %986 = vmatprep.subr.bf16.mxu1 %v854_v48  ;;  %v785_v45 = vld [vmem:[%s3208_s29 + $0x1f0] sm:$0xff]  ;;  %v911_v48 = vunpack.c.h.s8.bf16 %v783_v41 }
  0xf2   : > { %v913_v49 = vunpack.c.h.s8.bf16 %v785_v45 }
  0xf4   : > { %946 = vmatpush2.bf16.msra.mxu0 %v851_v35  ;;  %987 = vmatpush2.bf16.msra.mxu1 %v853_v51  ;;  %v906_v35 = vunpack.c.l.s8.bf16 %v786_v38  ;;  %v776_v51 = vld [vmem:[%s3208_s29 + $0x1a8] sm:$0xff] }
  0xf5   : > { %997 = vmatprep.subr.bf16.mxu0 %v848_v53  ;;  %1038 = vmatprep.subr.bf16.mxu1 %v850_v60  ;;  %v778_v53 = vld [vmem:[%s3208_s29 + $0x1b8] sm:$0xff]  ;;  %v903_v60 = vunpack.c.l.s8.bf16 %v783_v41 }
 0x13c   : > { %v2622_v37 = vpop.permute.xlu0 %2621 }
 0x13d   : > { %v2624_v10 = vunpack.i.h.bf16 %v2622_v37  ;;  %v2623_v28 = vunpack.i.l.bf16 %v2622_v37  ;;  %v905_v37 = vunpack.c.l.s8.bf16 %v785_v45 }
 0x13f   : > { %v709_v58 = vsel %vm462_vm0, %v691_v24, %v2624_v10  ;;  %v710_v27 = vsel %vm462_vm0, %v701_v9, %v2623_v28  ;;  %v801_v9 = vunpack.c.h.s8.bf16 %v729_v18  ;;  %v784_v24 = vld [vmem:[%s3208_s29 + $0x1e8] sm:$0xff]  ;;  %v896_v10 = vunpack.c.h.s8.bf16 %v776_v51 }
 0x140   : > { %v3358_v34 = vpack.c.bf16 %v709_v58, %v709_v58  ;;  %v722_v47 = vpack.c.bf16 %v710_v27, %v710_v27  ;;  %v912_v16 = vunpack.c.h.s8.bf16 %v784_v24  ;;  %v904_v50 = vunpack.c.l.s8.bf16 %v784_v24 }
 0x141   : > { %v898_v28 = vunpack.c.h.s8.bf16 %v778_v53  ;;  %v895_v58 = vunpack.c.h.s8.bf16 %v775_v6  ;;  %v897_v27 = vunpack.c.h.s8.bf16 %v777_v62 }
 0x142   : > { %947 = vmatprep.mubr.bf16.mxu0 %v722_v47  ;;  %988 = vmatprep.mubr.bf16.mxu1 %v722_v47 }
 0x143   : > { %948 = vmatmul.mubr.bf16.vlgmr.msra.gmra.mxu0 %v3358_v34  ;;  %989 = vmatmul.mubr.bf16.vlgmr.msra.gmra.mxu1 %v3358_v34 }
 0x144   : > { %998 = vmatpush1.bf16.msra.mxu0 %v847_v23  ;;  %1039 = vmatpush1.bf16.msra.mxu1 %v849_v32  ;;  %v890_v23 = vunpack.c.l.s8.bf16 %v778_v53  ;;  %v768_v32 = vld [vmem:[%s3208_s29 + $0x168] sm:$0xff] }
 0x145   : > { %1029 = vmatprep.mubr.bf16.mxu0 %v722_v47  ;;  %1070 = vmatprep.mubr.bf16.mxu1 %v722_v47  ;;  %v888_v47 = vunpack.c.l.s8.bf16 %v776_v51  ;;  %v880_v43 = vunpack.c.h.s8.bf16 %v768_v32  ;;  %v872_v20 = vunpack.c.l.s8.bf16 %v768_v32 }
 0x146   : > { %999 = vmatprep.subr.bf16.mxu0 %v840_v36  ;;  %1040 = vmatprep.subr.bf16.mxu1 %v842_v44  ;;  %v770_v36 = vld [vmem:[%s3208_s29 + $0x178] sm:$0xff]  ;;  %v887_v44 = vunpack.c.l.s8.bf16 %v775_v6 }
 0x148   : > { %1000 = vmatpush1.bf16.msra.mxu0 %v839_v46  ;;  %1041 = vmatpush1.bf16.msra.mxu1 %v841_v33  ;;  %v882_v46 = vunpack.c.h.s8.bf16 %v770_v36  ;;  %v767_v33 = vld [vmem:[%s3208_s29 + $0x160] sm:$0xff] }
 0x149   : > { %1001 = vmatprep.subr.bf16.mxu0 %v832_v54  ;;  %1042 = vmatprep.subr.bf16.mxu1 %v834_v12  ;;  %v769_v54 = vld [vmem:[%s3208_s29 + $0x170] sm:$0xff]  ;;  %v879_v12 = vunpack.c.h.s8.bf16 %v767_v33 }
 0x14a   : > { %v881_v19 = vunpack.c.h.s8.bf16 %v769_v54  ;;  %v873_v39 = vunpack.c.l.s8.bf16 %v769_v54 }
 0x14c   : > { %1002 = vmatpush1.bf16.msra.mxu0 %v831_v52  ;;  %1043 = vmatpush1.bf16.msra.mxu1 %v833_v55  ;;  %v874_v52 = vunpack.c.l.s8.bf16 %v770_v36  ;;  %v760_v55 = vld [vmem:[%s3208_s29 + $0x128] sm:$0xff] }
 0x14d   : > { %1003 = vmatprep.subr.bf16.mxu0 %v824_v29  ;;  %1044 = vmatprep.subr.bf16.mxu1 %v826_v57  ;;  %v762_v29 = vld [vmem:[%s3208_s29 + $0x138] sm:$0xff]  ;;  %v871_v57 = vunpack.c.l.s8.bf16 %v767_v33  ;;  %v864_v56 = vunpack.c.h.s8.bf16 %v760_v55  ;;  %v856_v59 = vunpack.c.l.s8.bf16 %v760_v55 }
 0x150   : > { %1004 = vmatpush1.bf16.msra.mxu0 %v823_v61  ;;  %1045 = vmatpush1.bf16.msra.mxu1 %v825_v40  ;;  %v866_v61 = vunpack.c.h.s8.bf16 %v762_v29  ;;  %v759_v40 = vld [vmem:[%s3208_s29 + $0x120] sm:$0xff] }
 0x151   : > { %1005 = vmatprep.subr.bf16.mxu0 %v816_v0  ;;  %1046 = vmatprep.subr.bf16.mxu1 %v818_v42  ;;  %v761_v0 = vld [vmem:[%s3208_s29 + $0x130] sm:$0xff]  ;;  %v863_v42 = vunpack.c.h.s8.bf16 %v759_v40 }
 0x152   : > { %v865_v3 = vunpack.c.h.s8.bf16 %v761_v0  ;;  %v857_v2 = vunpack.c.l.s8.bf16 %v761_v0 }
 0x154   : > { %1006 = vmatpush1.bf16.msra.mxu0 %v815_v5  ;;  %1047 = vmatpush1.bf16.msra.mxu1 %v817_v4  ;;  %v858_v5 = vunpack.c.l.s8.bf16 %v762_v29  ;;  %v1206_v4 = vld [vmem:[%s3053_s16 + $0x68] sm:$0xff] }
 0x155   : > { %1007 = vmatprep.subr.bf16.mxu0 %v808_v7  ;;  %1048 = vmatprep.subr.bf16.mxu1 %v810_v11  ;;  %v1238_v7 = vld [vmem:[%s3053_s16 + $0x168] sm:$0xff]  ;;  %v855_v11 = vunpack.c.l.s8.bf16 %v759_v40  ;;  %v1350_v13 = vunpack.c.h.s8.bf16 %v1206_v4  ;;  %v1346_v18 = vunpack.c.l.s8.bf16 %v1206_v4 }
 0x158   : > { %1008 = vmatpush1.bf16.msra.mxu0 %v807_v8  ;;  %1049 = vmatpush1.bf16.msra.mxu1 %v809_v14  ;;  %v1414_v8 = vunpack.c.h.s8.bf16 %v1238_v7  ;;  %v1205_v14 = vld [vmem:[%s3053_s16 + $0x60] sm:$0xff] }
 0x159   : > { %1009 = vmatprep.subr.bf16.mxu0 %v800_v15  ;;  %1050 = vmatprep.subr.bf16.mxu1 %v802_v1  ;;  %v1237_v15 = vld [vmem:[%s3053_s16 + $0x160] sm:$0xff]  ;;  %v1349_v1 = vunpack.c.h.s8.bf16 %v1205_v14 }
 0x15a   : > { %v1413_v17 = vunpack.c.h.s8.bf16 %v1237_v15  ;;  %v1409_v24 = vunpack.c.l.s8.bf16 %v1237_v15 }
 0x15c   : > { %1010 = vmatpush1.bf16.msra.mxu0 %v799_v30  ;;  %1051 = vmatpush1.bf16.msra.mxu1 %v801_v9  ;;  %v1410_v30 = vunpack.c.l.s8.bf16 %v1238_v7  ;;  %v1202_v9 = vld [vmem:[%s3053_s16 + $0x48] sm:$0xff] }
 0x15d   : > { %1011 = vmatprep.subr.bf16.mxu0 %v792_v21  ;;  %1052 = vmatprep.subr.bf16.mxu1 %v794_v25  ;;  %v1234_v21 = vld [vmem:[%s3053_s16 + $0x148] sm:$0xff]  ;;  %v1345_v25 = vunpack.c.l.s8.bf16 %v1205_v14  ;;  %v1342_v38 = vunpack.c.h.s8.bf16 %v1202_v9 }
 0x15e   : > { %v1402_v45 = vunpack.c.l.s8.bf16 %v1234_v21 }
 0x160   : > { %1012 = vmatpush1.bf16.msra.mxu0 %v791_v63  ;;  %1053 = vmatpush1.bf16.msra.mxu1 %v793_v26  ;;  %v1406_v63 = vunpack.c.h.s8.bf16 %v1234_v21  ;;  %v1201_v26 = vld [vmem:[%s3053_s16 + $0x40] sm:$0xff] }
 0x161   : > { %1013 = vmatprep.subr.bf16.mxu0 %v912_v16  ;;  %1054 = vmatprep.subr.bf16.mxu1 %v914_v22  ;;  %v1233_v16 = vld [vmem:[%s3053_s16 + $0x140] sm:$0xff]  ;;  %v1341_v22 = vunpack.c.h.s8.bf16 %v1201_v26 }
 0x162   : > { %v1405_v41 = vunpack.c.h.s8.bf16 %v1233_v16 }
 0x164   : > { %1014 = vmatpush2.bf16.msra.mxu0 %v911_v48  ;;  %1055 = vmatpush2.bf16.msra.mxu1 %v913_v49  ;;  %v1198_v48 = vld [vmem:[%s3053_s16 + $0x28] sm:$0xff] }
 0x165   : > { %1015 = vmatprep.subr.bf16.mxu0 %v904_v50  ;;  %1056 = vmatprep.subr.bf16.mxu1 %v906_v35  ;;  %v1230_v49 = vld [vmem:[%s3053_s16 + $0x128] sm:$0xff]  ;;  %v1337_v50 = vunpack.c.l.s8.bf16 %v1201_v26  ;;  %v1401_v35 = vunpack.c.l.s8.bf16 %v1233_v16  ;;  %v1334_v51 = vunpack.c.h.s8.bf16 %v1198_v48  ;;  %v1330_v6 = vunpack.c.l.s8.bf16 %v1198_v48 }
 0x166   : > { %v1398_v53 = vunpack.c.h.s8.bf16 %v1230_v49  ;;  %v1394_v62 = vunpack.c.l.s8.bf16 %v1230_v49 }
 0x168   : > { %1016 = vmatpush2.bf16.msra.mxu0 %v903_v60  ;;  %1057 = vmatpush2.bf16.msra.mxu1 %v905_v37  ;;  %v1197_v60 = vld [vmem:[%s3053_s16 + $0x20] sm:$0xff] }
 0x169   : > { %1017 = vmatprep.subr.bf16.mxu0 %v896_v10  ;;  %1058 = vmatprep.subr.bf16.mxu1 %v898_v28  ;;  %v1229_v37 = vld [vmem:[%s3053_s16 + $0x120] sm:$0xff]  ;;  %v1333_v10 = vunpack.c.h.s8.bf16 %v1197_v60 }
 0x16a   : > { %v1397_v28 = vunpack.c.h.s8.bf16 %v1229_v37 }
 0x16c   : > { %1018 = vmatpush2.bf16.msra.mxu0 %v895_v58  ;;  %1059 = vmatpush2.bf16.msra.mxu1 %v897_v27  ;;  %v1194_v58 = vld [vmem:[%s3053_s16 + $0x8] sm:$0xff] }
 0x16d   : > { %1019 = vmatprep.subr.bf16.mxu0 %v888_v47  ;;  %1060 = vmatprep.subr.bf16.mxu1 %v890_v23  ;;  %v1226_v27 = vld [vmem:[%s3053_s16 + $0x108] sm:$0xff]  ;;  %v1329_v47 = vunpack.c.l.s8.bf16 %v1197_v60  ;;  %v1393_v23 = vunpack.c.l.s8.bf16 %v1229_v37  ;;  %v1326_v32 = vunpack.c.h.s8.bf16 %v1194_v58  ;;  %v1322_v33 = vunpack.c.l.s8.bf16 %v1194_v58 }
 0x16e   : > { %v1390_v36 = vunpack.c.h.s8.bf16 %v1226_v27  ;;  %v1386_v54 = vunpack.c.l.s8.bf16 %v1226_v27 }
 0x170   : > { %1020 = vmatpush2.bf16.msra.mxu0 %v887_v44  ;;  %1061 = vmatpush2.bf16.msra.mxu1 %v889_v31  ;;  %v1193_v44 = vld [vmem:[%s3053_s16] sm:$0xff] }
 0x171   : > { %1021 = vmatprep.subr.bf16.mxu0 %v880_v43  ;;  %1062 = vmatprep.subr.bf16.mxu1 %v882_v46  ;;  %v1225_v31 = vld [vmem:[%s3053_s16 + $0x100] sm:$0xff]  ;;  %v1325_v43 = vunpack.c.h.s8.bf16 %v1193_v44 }
 0x172   : > { %v1389_v46 = vunpack.c.h.s8.bf16 %v1225_v31 }
 0x174   : > { %1022 = vmatpush2.bf16.msra.mxu0 %v879_v12  ;;  %1063 = vmatpush2.bf16.msra.mxu1 %v881_v19  ;;  %v1222_v12 = vld [vmem:[%s3053_s16 + $0xe8] sm:$0xff] }
 0x175   : > { %1023 = vmatprep.subr.bf16.mxu0 %v872_v20  ;;  %1064 = vmatprep.subr.bf16.mxu1 %v874_v52  ;;  %v1254_v19 = vld [vmem:[%s3053_s16 + $0x1e8] sm:$0xff]  ;;  %v1321_v20 = vunpack.c.l.s8.bf16 %v1193_v44  ;;  %v1385_v52 = vunpack.c.l.s8.bf16 %v1225_v31  ;;  %v1382_v55 = vunpack.c.h.s8.bf16 %v1222_v12  ;;  %v1378_v40 = vunpack.c.l.s8.bf16 %v1222_v12 }
 0x176   : > { %v1446_v29 = vunpack.c.h.s8.bf16 %v1254_v19  ;;  %v1442_v0 = vunpack.c.l.s8.bf16 %v1254_v19  ;;  %v3441_v44 = vld [vmem:[%s3066_s2 + $0x1] ss:$2 sm:$0xff] }
 0x178   : > { %1024 = vmatpush2.bf16.msra.mxu0 %v871_v57  ;;  %1065 = vmatpush2.bf16.msra.mxu1 %v873_v39  ;;  %v1221_v57 = vld [vmem:[%s3053_s16 + $0xe0] sm:$0xff] }
 0x179   : > { %1025 = vmatprep.subr.bf16.mxu0 %v864_v56  ;;  %1066 = vmatprep.subr.bf16.mxu1 %v866_v61  ;;  %v1253_v39 = vld [vmem:[%s3053_s16 + $0x1e0] sm:$0xff]  ;;  %v1381_v56 = vunpack.c.h.s8.bf16 %v1221_v57 }
 0x17a   : > { %v1445_v61 = vunpack.c.h.s8.bf16 %v1253_v39 }
 0x17c   : > { %1026 = vmatpush2.bf16.msra.mxu0 %v863_v42  ;;  %1067 = vmatpush2.bf16.msra.mxu1 %v865_v3  ;;  %v1218_v42 = vld [vmem:[%s3053_s16 + $0xc8] sm:$0xff] }
 0x17d   : > { %1027 = vmatprep.subr.bf16.mxu0 %v856_v59  ;;  %1068 = vmatprep.subr.bf16.mxu1 %v858_v5  ;;  %v1250_v3 = vld [vmem:[%s3053_s16 + $0x1c8] sm:$0xff]  ;;  %v1377_v59 = vunpack.c.l.s8.bf16 %v1221_v57  ;;  %v1441_v5 = vunpack.c.l.s8.bf16 %v1253_v39  ;;  %v1374_v4 = vunpack.c.h.s8.bf16 %v1218_v42  ;;  %v1370_v14 = vunpack.c.l.s8.bf16 %v1218_v42 }
 0x17e   : > { %v1438_v7 = vunpack.c.h.s8.bf16 %v1250_v3  ;;  %v1434_v15 = vunpack.c.l.s8.bf16 %v1250_v3 }
 0x180   : > { %1028 = vmatpush2.bf16.msra.mxu0 %v855_v11  ;;  %1069 = vmatpush2.bf16.msra.mxu1 %v857_v2  ;;  %v1217_v11 = vld [vmem:[%s3053_s16 + $0xc0] sm:$0xff] }
 0x181   : > { %1577 = vmatprep.subr.bf16.mxu0 %v1350_v13  ;;  %1618 = vmatprep.subr.bf16.mxu1 %v1414_v8  ;;  %v1249_v2 = vld [vmem:[%s3053_s16 + $0x1c0] sm:$0xff]  ;;  %v1373_v13 = vunpack.c.h.s8.bf16 %v1217_v11 }
 0x182   : > { %v1437_v8 = vunpack.c.h.s8.bf16 %v1249_v2 }
 0x183   : > { %1030 = vmatmul.mubr.bf16.vlgmr.msra.gmra.mxu0 %v3358_v34  ;;  %1071 = vmatmul.mubr.bf16.vlgmr.msra.gmra.mxu1 %v3358_v34  ;;  %v1338_v34 = vunpack.c.l.s8.bf16 %v1202_v9 }
 0x184   : > { %1578 = vmatpush1.bf16.msra.mxu0 %v1349_v1  ;;  %1619 = vmatpush1.bf16.msra.mxu1 %v1413_v17  ;;  %v1214_v1 = vld [vmem:[%s3053_s16 + $0xa8] sm:$0xff] }
 0x185   : > { %1579 = vmatprep.subr.bf16.mxu0 %v1346_v18  ;;  %1620 = vmatprep.subr.bf16.mxu1 %v1410_v30  ;;  %v1246_v17 = vld [vmem:[%s3053_s16 + $0x1a8] sm:$0xff]  ;;  %v1369_v18 = vunpack.c.l.s8.bf16 %v1217_v11  ;;  %v1433_v30 = vunpack.c.l.s8.bf16 %v1249_v2  ;;  %v1366_v9 = vunpack.c.h.s8.bf16 %v1214_v1  ;;  %v1362_v26 = vunpack.c.l.s8.bf16 %v1214_v1  ;;  %v1269_v1 = vld [vmem:[%s3053_s16 + $0x260] sm:$0xff] }
 0x186   : > { %v1430_v21 = vunpack.c.h.s8.bf16 %v1246_v17  ;;  %v1426_v16 = vunpack.c.l.s8.bf16 %v1246_v17  ;;  %v1301_v17 = vld [vmem:[%s3053_s16 + $0x360] sm:$0xff] }
 0x188   : > { %1580 = vmatpush1.bf16.msra.mxu0 %v1345_v25  ;;  %1621 = vmatpush1.bf16.msra.mxu1 %v1409_v24  ;;  %v1213_v25 = vld [vmem:[%s3053_s16 + $0xa0] sm:$0xff] }
 0x189   : > { %1581 = vmatprep.subr.bf16.mxu0 %v1342_v38  ;;  %1622 = vmatprep.subr.bf16.mxu1 %v1406_v63  ;;  %v1245_v24 = vld [vmem:[%s3053_s16 + $0x1a0] sm:$0xff]  ;;  %v1365_v38 = vunpack.c.h.s8.bf16 %v1213_v25 }
 0x18a   : > { %v1429_v63 = vunpack.c.h.s8.bf16 %v1245_v24 }
 0x18c   : > { %1582 = vmatpush1.bf16.msra.mxu0 %v1341_v22  ;;  %1623 = vmatpush1.bf16.msra.mxu1 %v1405_v41  ;;  %v1210_v22 = vld [vmem:[%s3053_s16 + $0x88] sm:$0xff] }
 0x18d   : > { %1583 = vmatprep.subr.bf16.mxu0 %v1338_v34  ;;  %1624 = vmatprep.subr.bf16.mxu1 %v1402_v45  ;;  %v1242_v41 = vld [vmem:[%s3053_s16 + $0x188] sm:$0xff]  ;;  %v1361_v34 = vunpack.c.l.s8.bf16 %v1213_v25  ;;  %v1425_v45 = vunpack.c.l.s8.bf16 %v1245_v24  ;;  %v1358_v48 = vunpack.c.h.s8.bf16 %v1210_v22  ;;  %v1354_v60 = vunpack.c.l.s8.bf16 %v1210_v22 }
 0x18e   : > { %v1422_v49 = vunpack.c.h.s8.bf16 %v1242_v41  ;;  %v1418_v37 = vunpack.c.l.s8.bf16 %v1242_v41  ;;  %v1477_v25 = vunpack.c.h.s8.bf16 %v1269_v1  ;;  %v1541_v24 = vunpack.c.h.s8.bf16 %v1301_v17  ;;  %v1266_v22 = vld [vmem:[%s3053_s16 + $0x248] sm:$0xff] }
 0x18f   : > { %v1298_v41 = vld [vmem:[%s3053_s16 + $0x348] sm:$0xff] }
 0x190   : > { %1584 = vmatpush1.bf16.msra.mxu0 %v1337_v50  ;;  %1625 = vmatpush1.bf16.msra.mxu1 %v1401_v35  ;;  %v1209_v50 = vld [vmem:[%s3053_s16 + $0x80] sm:$0xff] }
 0x191   : > { %1585 = vmatprep.subr.bf16.mxu0 %v1334_v51  ;;  %1626 = vmatprep.subr.bf16.mxu1 %v1398_v53  ;;  %v1241_v35 = vld [vmem:[%s3053_s16 + $0x180] sm:$0xff]  ;;  %v1357_v51 = vunpack.c.h.s8.bf16 %v1209_v50 }
 0x192   : > { %v1421_v53 = vunpack.c.h.s8.bf16 %v1241_v35 }
 0x194   : > { %1586 = vmatpush1.bf16.msra.mxu0 %v1333_v10  ;;  %1627 = vmatpush1.bf16.msra.mxu1 %v1397_v28  ;;  %v3425_v10 = vld [vmem:[%s3053_s16 + $0x268] sm:$0xff] }
 0x195   : > { %1587 = vmatprep.subr.bf16.mxu0 %v1330_v6  ;;  %1628 = vmatprep.subr.bf16.mxu1 %v1394_v62  ;;  %v3428_v28 = vld [vmem:[%s3053_s16 + $0x368] sm:$0xff]  ;;  %v1353_v6 = vunpack.c.l.s8.bf16 %v1209_v50  ;;  %v1417_v62 = vunpack.c.l.s8.bf16 %v1241_v35  ;;  %v1478_v58 = vunpack.c.h.s8.bf16 %v3425_v10  ;;  %v1265_v50 = vld [vmem:[%s3053_s16 + $0x240] sm:$0xff] }
 0x196   : > { %v1542_v27 = vunpack.c.h.s8.bf16 %v3428_v28  ;;  %v1297_v35 = vld [vmem:[%s3053_s16 + $0x340] sm:$0xff] }
 0x198   : > { %1588 = vmatpush1.bf16.msra.mxu0 %v1329_v47  ;;  %1629 = vmatpush1.bf16.msra.mxu1 %v1393_v23  ;;  %v1080_v47 = vlaneseq }
 0x199   : > { %1589 = vmatprep.subr.bf16.mxu0 %v1326_v32  ;;  %1630 = vmatprep.subr.bf16.mxu1 %v1390_v36 }
 0x19a   : > { %v3432_v23 = vshrl.u32 %v1080_v47, 7  ;;  %v1261_v47 = vld [vmem:[%s3053_s16 + $0x220] sm:$0xff] }
 0x19c   : > { %1590 = vmatpush1.bf16.msra.mxu0 %v1325_v43  ;;  %1631 = vmatpush1.bf16.msra.mxu1 %v1389_v46  ;;  %v3435_v32 = vsub.s32 0, %v3432_v23  ;;  %v3438_v36 = vsub.s32 2, %v3432_v23  ;;  %v3444_v31 = vsub.s32 1, %v3432_v23  ;;  %v3447_v43 = vsub.s32 3, %v3432_v23  ;;  %v3450_v46 = vld [vmem:[%s3066_s2] ss:$2 sm:$0xff] }
 0x19d   : > { %1591 = vmatprep.subr.bf16.mxu0 %v1322_v33  ;;  %1632 = vmatprep.subr.bf16.mxu1 %v1386_v54 }
 0x19e   : > { %v1083_v33 = vrot.slane %v3441_v44, %v3435_v32  ;;  %v1091_v54 = vrot.slane %v3441_v44, %v3438_v36  ;;  %v1132_v12 = vrot.slane %v3450_v46, %v3435_v32  ;;  %v1140_v19 = vrot.slane %v3450_v46, %v3438_v36 }
 0x1a0   : > { %1592 = vmatpush1.bf16.msra.mxu0 %v1321_v20  ;;  %1633 = vmatpush1.bf16.msra.mxu1 %v1385_v52  ;;  %v1087_v20 = vrot.slane %v3441_v44, %v3444_v31  ;;  %v1095_v52 = vrot.slane %v3441_v44, %v3447_v43 }
 0x1a1   : > { %1593 = vmatprep.subr.bf16.mxu0 %v1382_v55  ;;  %1634 = vmatprep.subr.bf16.mxu1 %v1446_v29 }
 0x1a4   : > { %1594 = vmatpush2.bf16.msra.mxu0 %v1381_v56  ;;  %1635 = vmatpush2.bf16.msra.mxu1 %v1445_v61  ;;  %v1136_v56 = vrot.slane %v3450_v46, %v3444_v31  ;;  %v1144_v61 = vrot.slane %v3450_v46, %v3447_v43 }
 0x1a5   : > { %1595 = vmatprep.subr.bf16.mxu0 %v1378_v40  ;;  %1636 = vmatprep.subr.bf16.mxu1 %v1442_v0 }
 0x1a8   : > { %1596 = vmatpush2.bf16.msra.mxu0 %v1377_v59  ;;  %1637 = vmatpush2.bf16.msra.mxu1 %v1441_v5 }
 0x1a9   : > { %1597 = vmatprep.subr.bf16.mxu0 %v1374_v4  ;;  %1638 = vmatprep.subr.bf16.mxu1 %v1438_v7 }
 0x1ac   : > { %1598 = vmatpush2.bf16.msra.mxu0 %v1373_v13  ;;  %1639 = vmatpush2.bf16.msra.mxu1 %v1437_v8 }
 0x1ad   : > { %1599 = vmatprep.subr.bf16.mxu0 %v1370_v14  ;;  %1640 = vmatprep.subr.bf16.mxu1 %v1434_v15 }
 0x1b0   : > { %1600 = vmatpush2.bf16.msra.mxu0 %v1369_v18  ;;  %1641 = vmatpush2.bf16.msra.mxu1 %v1433_v30 }
 0x1b1   : > { %1601 = vmatprep.subr.bf16.mxu0 %v1366_v9  ;;  %1642 = vmatprep.subr.bf16.mxu1 %v1430_v21 }
 0x1b4   : > { %1602 = vmatpush2.bf16.msra.mxu0 %v1365_v38  ;;  %1643 = vmatpush2.bf16.msra.mxu1 %v1429_v63 }
 0x1b5   : > { %1603 = vmatprep.subr.bf16.mxu0 %v1362_v26  ;;  %1644 = vmatprep.subr.bf16.mxu1 %v1426_v16  ;;  %v1474_v26 = vunpack.c.l.s8.bf16 %v3425_v10  ;;  %v1538_v16 = vunpack.c.l.s8.bf16 %v3428_v28  ;;  %v1262_v10 = vld [vmem:[%s3053_s16 + $0x228] sm:$0xff] }
 0x1b6   : > { %v1294_v28 = vld [vmem:[%s3053_s16 + $0x328] sm:$0xff] }
 0x1b8   : > { %1604 = vmatpush2.bf16.msra.mxu0 %v1361_v34  ;;  %1645 = vmatpush2.bf16.msra.mxu1 %v1425_v45  ;;  %v1473_v34 = vunpack.c.l.s8.bf16 %v1269_v1  ;;  %v1537_v45 = vunpack.c.l.s8.bf16 %v1301_v17 }
 0x1b9   : > { %1605 = vmatprep.subr.bf16.mxu0 %v1358_v48  ;;  %1646 = vmatprep.subr.bf16.mxu1 %v1422_v49  ;;  %v1470_v48 = vunpack.c.h.s8.bf16 %v1266_v22  ;;  %v1534_v49 = vunpack.c.h.s8.bf16 %v1298_v41 }
 0x1bc   : > { %1606 = vmatpush2.bf16.msra.mxu0 %v1357_v51  ;;  %1647 = vmatpush2.bf16.msra.mxu1 %v1421_v53  ;;  %v1469_v51 = vunpack.c.h.s8.bf16 %v1265_v50  ;;  %v1533_v53 = vunpack.c.h.s8.bf16 %v1297_v35 }
 0x1bd   : > { %1607 = vmatprep.subr.bf16.mxu0 %v1354_v60  ;;  %1648 = vmatprep.subr.bf16.mxu1 %v1418_v37  ;;  %v1466_v60 = vunpack.c.l.s8.bf16 %v1266_v22  ;;  %v1530_v37 = vunpack.c.l.s8.bf16 %v1298_v41  ;;  %v1281_v41 = vld [vmem:[%s3053_s16 + $0x2c0] sm:$0xff] }
 0x1c0   : > { %1608 = vmatpush2.bf16.msra.mxu0 %v1353_v6  ;;  %1649 = vmatpush2.bf16.msra.mxu1 %v1417_v62  ;;  %v1465_v6 = vunpack.c.l.s8.bf16 %v1265_v50  ;;  %v1529_v62 = vunpack.c.l.s8.bf16 %v1297_v35  ;;  %v1278_v35 = vld [vmem:[%s3053_s16 + $0x2a8] sm:$0xff] }
 0x1c1   : > { %1659 = vmatprep.subr.bf16.mxu0 %v1478_v58  ;;  %1700 = vmatprep.subr.bf16.mxu1 %v1542_v27  ;;  %v1462_v58 = vunpack.c.h.s8.bf16 %v1262_v10  ;;  %v1526_v27 = vunpack.c.h.s8.bf16 %v1294_v28 }
 0x203   : > { %v949_v55 = vpop.f32.mrf.mxu0  ;;  %v990_v29 = vpop.f32.mrf.mxu1 }
 0x204   : > { %v1120_v57 = vmul.f32 %v1083_v33, %v949_v55  ;;  %v1122_v39 = vmul.f32 %v1091_v54, %v990_v29  ;;  %v1293_v33 = vld [vmem:[%s3053_s16 + $0x320] sm:$0xff]  ;;  %v1461_v54 = vunpack.c.h.s8.bf16 %v1261_v47  ;;  %v1290_v55 = vld [vmem:[%s3053_s16 + $0x308] sm:$0xff]  ;;  %v1457_v29 = vunpack.c.l.s8.bf16 %v1261_v47 }
 0x205   : > { %v951_v40 = vpop.f32.mrf.mxu0  ;;  %v992_v0 = vpop.f32.mrf.mxu1  ;;  %v1106_v47 = vsub.s32 6, %v3432_v23 }
 0x206   : > { %v1169_v42 = vadd.f32 %v1132_v12, %v1120_v57  ;;  %v1171_v3 = vadd.f32 %v1140_v19, %v1122_v39  ;;  %v1121_v59 = vmul.f32 %v1087_v20, %v951_v40  ;;  %v1123_v5 = vmul.f32 %v1095_v52, %v992_v0  ;;  %v1258_v52 = vld [vmem:[%s3053_s16 + $0x208] sm:$0xff]  ;;  %v1289_v40 = vld [vmem:[%s3053_s16 + $0x300] sm:$0xff] }
 0x207   : > { %v953_v4 = vpop.f32.mrf.mxu0  ;;  %v994_v7 = vpop.f32.mrf.mxu1  ;;  %v1525_v12 = vunpack.c.h.s8.bf16 %v1293_v33  ;;  %v1458_v19 = vunpack.c.l.s8.bf16 %v1262_v10  ;;  %v1522_v20 = vunpack.c.l.s8.bf16 %v1294_v28  ;;  %v1521_v57 = vunpack.c.l.s8.bf16 %v1293_v33  ;;  %v1277_v28 = vld [vmem:[%s3053_s16 + $0x2a0] sm:$0xff] }
 0x208   : > { %v1170_v11 = vadd.f32 %v1136_v56, %v1121_v59  ;;  %v1172_v2 = vadd.f32 %v1144_v61, %v1123_v5  ;;  %v1177_v13 = vmax.f32 %v1169_v42, 0.0  ;;  %v1179_v8 = vmax.f32 %v1171_v3, 0.0  ;;  %v1257_v61 = vld [vmem:[%s3053_s16 + $0x200] sm:$0xff]  ;;  %v1286_v5 = vld [vmem:[%s3053_s16 + $0x2e8] sm:$0xff] }
 0x209   : > { %v954_v14 = vpop.f32.mrf.mxu0  ;;  %v995_v15 = vpop.f32.mrf.mxu1  ;;  %v1454_v39 = vunpack.c.h.s8.bf16 %v1258_v52  ;;  %v1518_v56 = vunpack.c.h.s8.bf16 %v1290_v55  ;;  %v1453_v0 = vunpack.c.h.s8.bf16 %v1257_v61  ;;  %v1517_v42 = vunpack.c.h.s8.bf16 %v1289_v40  ;;  %v1318_v4 = vld [vmem:[%s3053_s16 + $0x3e8] sm:$0xff] }
 0x20a   : > { %v1178_v18 = vmax.f32 %v1170_v11, 0.0  ;;  %v1180_v30 = vmax.f32 %v1172_v2, 0.0  ;;  %v3474_v38 = vpack.c.bf16 %v1177_v13, %v1177_v13  ;;  %v3476_v63 = vpack.c.bf16 %v1179_v8, %v1179_v8  ;;  %v1285_v8 = vld [vmem:[%s3053_s16 + $0x2e0] sm:$0xff] }
 0x20b   : > { %v1450_v3 = vunpack.c.l.s8.bf16 %v1258_v52  ;;  %v1514_v59 = vunpack.c.l.s8.bf16 %v1290_v55  ;;  %v1449_v7 = vunpack.c.l.s8.bf16 %v1257_v61  ;;  %v1513_v11 = vunpack.c.l.s8.bf16 %v1289_v40  ;;  %v1317_v14 = vld [vmem:[%s3053_s16 + $0x3e0] sm:$0xff]  ;;  %v1306_v52 = vld [vmem:[%s3053_s16 + $0x388] sm:$0xff] }
 0x20c   : > { %v3470_v9 = vpack.c.bf16 %v1178_v18, %v1178_v18  ;;  %v3472_v21 = vpack.c.bf16 %v1180_v30, %v1180_v30  ;;  %v1510_v2 = vunpack.c.h.s8.bf16 %v1286_v5  ;;  %v1574_v13 = vunpack.c.h.s8.bf16 %v1318_v4  ;;  %v1282_v30 = vld [vmem:[%s3053_s16 + $0x2c8] sm:$0xff]  ;;  %v1273_v40 = vld [vmem:[%s3053_s16 + $0x280] sm:$0xff] }
 0x20d   : > { %v1509_v15 = vunpack.c.h.s8.bf16 %v1285_v8  ;;  %v1573_v1 = vunpack.c.h.s8.bf16 %v1317_v14  ;;  %v1506_v17 = vunpack.c.l.s8.bf16 %v1286_v5  ;;  %v1570_v18 = vunpack.c.l.s8.bf16 %v1318_v4 }
 0x20e   : > { %1609 = vmatprep.mubr.bf16.mxu0 %v3470_v9  ;;  %1650 = vmatprep.mubr.bf16.mxu1 %v3472_v21  ;;  %v1490_v33 = vunpack.c.l.s8.bf16 %v1278_v35  ;;  %v1550_v61 = vunpack.c.h.s8.bf16 %v1306_v52 }
 0x20f   : > { %1610 = vmatmul.mubr.bf16.vlgmr.msra.gmra.mxu0 %v3474_v38  ;;  %1651 = vmatmul.mubr.bf16.vlgmr.msra.gmra.mxu1 %v3476_v63 }
 0x210   : > { %1660 = vmatpush1.bf16.msra.mxu0 %v1477_v25  ;;  %1701 = vmatpush1.bf16.msra.mxu1 %v1541_v24  ;;  %v1314_v25 = vld [vmem:[%s3053_s16 + $0x3c8] sm:$0xff]  ;;  %v1505_v24 = vunpack.c.l.s8.bf16 %v1285_v8  ;;  %v1485_v8 = vunpack.c.h.s8.bf16 %v1273_v40 }
 0x211   : > { %1661 = vmatprep.subr.bf16.mxu0 %v1474_v26  ;;  %1702 = vmatprep.subr.bf16.mxu1 %v1538_v16  ;;  %v1569_v26 = vunpack.c.l.s8.bf16 %v1317_v14  ;;  %v1502_v16 = vunpack.c.h.s8.bf16 %v1282_v30  ;;  %v1566_v22 = vunpack.c.h.s8.bf16 %v1314_v25  ;;  %v1562_v50 = vunpack.c.l.s8.bf16 %v1314_v25 }
 0x214   : > { %1662 = vmatpush1.bf16.msra.mxu0 %v1473_v34  ;;  %1703 = vmatpush1.bf16.msra.mxu1 %v1537_v45  ;;  %v1313_v34 = vld [vmem:[%s3053_s16 + $0x3c0] sm:$0xff]  ;;  %v1501_v45 = vunpack.c.h.s8.bf16 %v1281_v41 }
 0x215   : > { %1663 = vmatprep.subr.bf16.mxu0 %v1470_v48  ;;  %1704 = vmatprep.subr.bf16.mxu1 %v1534_v49  ;;  %v1565_v48 = vunpack.c.h.s8.bf16 %v1313_v34  ;;  %v1498_v49 = vunpack.c.l.s8.bf16 %v1282_v30 }
 0x218   : > { %1664 = vmatpush1.bf16.msra.mxu0 %v1469_v51  ;;  %1705 = vmatpush1.bf16.msra.mxu1 %v1533_v53  ;;  %v1310_v51 = vld [vmem:[%s3053_s16 + $0x3a8] sm:$0xff]  ;;  %v1497_v53 = vunpack.c.l.s8.bf16 %v1281_v41 }
 0x219   : > { %1665 = vmatprep.subr.bf16.mxu0 %v1466_v60  ;;  %1706 = vmatprep.subr.bf16.mxu1 %v1530_v37  ;;  %v1561_v60 = vunpack.c.l.s8.bf16 %v1313_v34  ;;  %v1494_v37 = vunpack.c.h.s8.bf16 %v1278_v35  ;;  %v1558_v10 = vunpack.c.h.s8.bf16 %v1310_v51 }
 0x21c   : > { %1666 = vmatpush1.bf16.msra.mxu0 %v1465_v6  ;;  %1707 = vmatpush1.bf16.msra.mxu1 %v1529_v62  ;;  %v1309_v6 = vld [vmem:[%s3053_s16 + $0x3a0] sm:$0xff]  ;;  %v1493_v62 = vunpack.c.h.s8.bf16 %v1277_v28 }
 0x21d   : > { %1667 = vmatprep.subr.bf16.mxu0 %v1462_v58  ;;  %1708 = vmatprep.subr.bf16.mxu1 %v1526_v27  ;;  %v1557_v58 = vunpack.c.h.s8.bf16 %v1309_v6  ;;  %v1098_v27 = vsub.s32 4, %v3432_v23 }
 0x21f   : > { %v1099_v55 = vrot.slane %v3441_v44, %v1098_v27 }
 0x220   : > { %1668 = vmatpush1.bf16.msra.mxu0 %v1461_v54  ;;  %1709 = vmatpush1.bf16.msra.mxu1 %v1525_v12  ;;  %v1554_v54 = vunpack.c.l.s8.bf16 %v1310_v51  ;;  %v1102_v12 = vsub.s32 5, %v3432_v23 }
 0x221   : > { %1669 = vmatprep.subr.bf16.mxu0 %v1458_v19  ;;  %1710 = vmatprep.subr.bf16.mxu1 %v1522_v20  ;;  %v1110_v19 = vsub.s32 7, %v3432_v23  ;;  %v1274_v20 = vld [vmem:[%s3053_s16 + $0x288] sm:$0xff]  ;;  %v1156_v23 = vrot.slane %v3450_v46, %v1106_v47 }
 0x224   : > { %1670 = vmatpush1.bf16.msra.mxu0 %v1457_v29  ;;  %1711 = vmatpush1.bf16.msra.mxu1 %v1521_v57  ;;  %v1107_v29 = vrot.slane %v3441_v44, %v1106_v47  ;;  %v1489_v57 = vunpack.c.l.s8.bf16 %v1277_v28 }
 0x225   : > { %1671 = vmatprep.subr.bf16.mxu0 %v1454_v39  ;;  %1712 = vmatprep.subr.bf16.mxu1 %v1518_v56  ;;  %v1553_v39 = vunpack.c.l.s8.bf16 %v1309_v6  ;;  %v1486_v56 = vunpack.c.h.s8.bf16 %v1274_v20  ;;  %v1239_v6 = vld [vmem:[%s3053_s16 + $0x170] sm:$0xff] }
 0x228   : > { %1672 = vmatpush1.bf16.msra.mxu0 %v1453_v0  ;;  %1713 = vmatpush1.bf16.msra.mxu1 %v1517_v42  ;;  %v1305_v0 = vld [vmem:[%s3053_s16 + $0x380] sm:$0xff]  ;;  %v1148_v42 = vrot.slane %v3450_v46, %v1098_v27 }
 0x229   : > { %1673 = vmatprep.subr.bf16.mxu0 %v1450_v3  ;;  %1714 = vmatprep.subr.bf16.mxu1 %v1514_v59  ;;  %v1103_v3 = vrot.slane %v3441_v44, %v1102_v12  ;;  %v1111_v59 = vrot.slane %v3441_v44, %v1110_v19  ;;  %v1549_v14 = vunpack.c.h.s8.bf16 %v1305_v0  ;;  %v1546_v44 = vunpack.c.l.s8.bf16 %v1306_v52  ;;  %v1236_v52 = vld [vmem:[%s3053_s16 + $0x158] sm:$0xff] }
 0x22c   : > { %1674 = vmatpush1.bf16.msra.mxu0 %v1449_v7  ;;  %1715 = vmatpush1.bf16.msra.mxu1 %v1513_v11  ;;  %v1152_v7 = vrot.slane %v3450_v46, %v1102_v12  ;;  %v1160_v11 = vrot.slane %v3450_v46, %v1110_v19  ;;  %v1240_v46 = vld [vmem:[%s3053_s16 + $0x178] sm:$0xff] }
 0x22d   : > { %1675 = vmatprep.subr.bf16.mxu0 %v1510_v2  ;;  %1716 = vmatprep.subr.bf16.mxu1 %v1574_v13  ;;  %v1412_v19 = vunpack.c.l.s8.bf16 %v1240_v46 }
 0x230   : > { %1676 = vmatpush2.bf16.msra.mxu0 %v1509_v15  ;;  %1717 = vmatpush2.bf16.msra.mxu1 %v1573_v1 }
 0x231   : > { %1677 = vmatprep.subr.bf16.mxu0 %v1506_v17  ;;  %1718 = vmatprep.subr.bf16.mxu1 %v1570_v18  ;;  %v1482_v17 = vunpack.c.l.s8.bf16 %v1274_v20  ;;  %v1204_v20 = vld [vmem:[%s3053_s16 + $0x58] sm:$0xff] }
 0x234   : > { %1678 = vmatpush2.bf16.msra.mxu0 %v1505_v24  ;;  %1719 = vmatpush2.bf16.msra.mxu1 %v1569_v26  ;;  %v1208_v26 = vld [vmem:[%s3053_s16 + $0x78] sm:$0xff] }
 0x235   : > { %1679 = vmatprep.subr.bf16.mxu0 %v1502_v16  ;;  %1720 = vmatprep.subr.bf16.mxu1 %v1566_v22  ;;  %v1348_v12 = vunpack.c.l.s8.bf16 %v1208_v26 }
 0x238   : > { %1680 = vmatpush2.bf16.msra.mxu0 %v1501_v45  ;;  %1721 = vmatpush2.bf16.msra.mxu1 %v1565_v48  ;;  %v1481_v45 = vunpack.c.l.s8.bf16 %v1273_v40  ;;  %v1545_v48 = vunpack.c.l.s8.bf16 %v1305_v0  ;;  %v1340_v0 = vunpack.c.l.s8.bf16 %v1204_v20 }
 0x239   : > { %1681 = vmatprep.subr.bf16.mxu0 %v1498_v49  ;;  %1722 = vmatprep.subr.bf16.mxu1 %v1562_v50 }
 0x23c   : > { %1682 = vmatpush2.bf16.msra.mxu0 %v1497_v53  ;;  %1723 = vmatpush2.bf16.msra.mxu1 %v1561_v60  ;;  %v1352_v53 = vunpack.c.h.s8.bf16 %v1208_v26  ;;  %v1416_v60 = vunpack.c.h.s8.bf16 %v1240_v46 }
 0x23d   : > { %1683 = vmatprep.subr.bf16.mxu0 %v1494_v37  ;;  %1724 = vmatprep.subr.bf16.mxu1 %v1558_v10  ;;  %v1207_v37 = vld [vmem:[%s3053_s16 + $0x70] sm:$0xff] }
 0x23e   : > { %v1351_v27 = vunpack.c.h.s8.bf16 %v1207_v37 }
 0x240   : > { %1684 = vmatpush2.bf16.msra.mxu0 %v1493_v62  ;;  %1725 = vmatpush2.bf16.msra.mxu1 %v1557_v58 }
 0x241   : > { %1685 = vmatprep.subr.bf16.mxu0 %v1490_v33  ;;  %1726 = vmatprep.subr.bf16.mxu1 %v1554_v54  ;;  %v1415_v54 = vunpack.c.h.s8.bf16 %v1239_v6 }
 0x243   : > { %v1031_v5 = vpop.f32.mrf.mxu0  ;;  %v1072_v4 = vpop.f32.mrf.mxu1 }
 0x244   : > { %v1124_v2 = vmul.f32 %v1099_v55, %v1031_v5  ;;  %v1126_v13 = vmul.f32 %v1107_v29, %v1072_v4  ;;  %1686 = vmatpush2.bf16.msra.mxu0 %v1489_v57  ;;  %1727 = vmatpush2.bf16.msra.mxu1 %v1553_v39  ;;  %v1347_v55 = vunpack.c.l.s8.bf16 %v1207_v37  ;;  %v1411_v29 = vunpack.c.l.s8.bf16 %v1239_v6  ;;  %v1203_v39 = vld [vmem:[%s3053_s16 + $0x50] sm:$0xff]  ;;  %v1252_v6 = vld [vmem:[%s3053_s16 + $0x1d8] sm:$0xff] }
 0x245   : > { %v1033_v15 = vpop.f32.mrf.mxu0  ;;  %v1074_v1 = vpop.f32.mrf.mxu1  ;;  %1687 = vmatprep.subr.bf16.mxu0 %v1486_v56  ;;  %1728 = vmatprep.subr.bf16.mxu1 %v1550_v61  ;;  %v1344_v57 = vunpack.c.h.s8.bf16 %v1204_v20  ;;  %v1408_v56 = vunpack.c.h.s8.bf16 %v1236_v52  ;;  %v1235_v61 = vld [vmem:[%s3053_s16 + $0x150] sm:$0xff]  ;;  %v1343_v40 = vunpack.c.h.s8.bf16 %v1203_v39  ;;  %v1440_v20 = vunpack.c.h.s8.bf16 %v1252_v6 }
 0x246   : > { %v1173_v18 = vadd.f32 %v1148_v42, %v1124_v2  ;;  %v1175_v30 = vadd.f32 %v1156_v23, %v1126_v13  ;;  %v1125_v25 = vmul.f32 %v1103_v3, %v1033_v15  ;;  %v1127_v24 = vmul.f32 %v1111_v59, %v1074_v1  ;;  %v1232_v23 = vld [vmem:[%s3053_s16 + $0x138] sm:$0xff]  ;;  %v1199_v4 = vld [vmem:[%s3053_s16 + $0x30] sm:$0xff] }
 0x247   : > { %v1035_v16 = vpop.f32.mrf.mxu0  ;;  %v1076_v22 = vpop.f32.mrf.mxu1  ;;  %v1404_v42 = vunpack.c.l.s8.bf16 %v1236_v52  ;;  %v1339_v3 = vunpack.c.l.s8.bf16 %v1203_v39  ;;  %v1403_v59 = vunpack.c.l.s8.bf16 %v1235_v61  ;;  %v1335_v2 = vunpack.c.h.s8.bf16 %v1199_v4  ;;  %v1196_v15 = vld [vmem:[%s3053_s16 + $0x18] sm:$0xff]  ;;  %v1251_v52 = vld [vmem:[%s3053_s16 + $0x1d0] sm:$0xff] }
 0x248   : > { %v1174_v41 = vadd.f32 %v1152_v7, %v1125_v25  ;;  %v1176_v34 = vadd.f32 %v1160_v11, %v1127_v24  ;;  %1688 = vmatpush2.bf16.msra.mxu0 %v1485_v8  ;;  %1729 = vmatpush2.bf16.msra.mxu1 %v1549_v14  ;;  %v1181_v49 = vmax.f32 %v1173_v18, 0.0  ;;  %v1183_v50 = vmax.f32 %v1175_v30, 0.0  ;;  %v1231_v11 = vld [vmem:[%s3053_s16 + $0x130] sm:$0xff]  ;;  %v1228_v1 = vld [vmem:[%s3053_s16 + $0x118] sm:$0xff] }
 0x249   : > { %v1036_v35 = vpop.f32.mrf.mxu0  ;;  %v1077_v51 = vpop.f32.mrf.mxu1  ;;  %1689 = vmatprep.subr.bf16.mxu0 %v1482_v17  ;;  %1730 = vmatprep.subr.bf16.mxu1 %v1546_v44  ;;  %v1400_v7 = vunpack.c.h.s8.bf16 %v1232_v23  ;;  %v1399_v13 = vunpack.c.h.s8.bf16 %v1231_v11  ;;  %v1396_v14 = vunpack.c.l.s8.bf16 %v1232_v23  ;;  %v1331_v17 = vunpack.c.l.s8.bf16 %v1199_v4  ;;  %v1195_v30 = vld [vmem:[%s3053_s16 + $0x10] sm:$0xff] }
 0x24a   : > { %v1182_v10 = vmax.f32 %v1174_v41, 0.0  ;;  %v1184_v28 = vmax.f32 %v1176_v34, 0.0  ;;  %v3532_v47 = vpack.c.bf16 %v1181_v49, %v1181_v49  ;;  %v3534_v33 = vpack.c.bf16 %v1183_v50, %v1183_v50  ;;  %v1227_v24 = vld [vmem:[%s3053_s16 + $0x110] sm:$0xff]  ;;  %v1224_v41 = vld [vmem:[%s3053_s16 + $0xf8] sm:$0xff] }
 0x24b   : > { %v1395_v44 = vunpack.c.l.s8.bf16 %v1231_v11  ;;  %v1328_v18 = vunpack.c.h.s8.bf16 %v1196_v15  ;;  %v1392_v25 = vunpack.c.h.s8.bf16 %v1228_v1  ;;  %v1327_v26 = vunpack.c.h.s8.bf16 %v1195_v30  ;;  %v1256_v34 = vld [vmem:[%s3053_s16 + $0x1f8] sm:$0xff]  ;;  %v1223_v50 = vld [vmem:[%s3053_s16 + $0xf0] sm:$0xff] }
 0x24c   : > { %v3528_v62 = vpack.c.bf16 %v1182_v10, %v1182_v10  ;;  %v3530_v58 = vpack.c.bf16 %v1184_v28, %v1184_v28  ;;  %1690 = vmatpush2.bf16.msra.mxu0 %v1481_v45  ;;  %1731 = vmatpush2.bf16.msra.mxu1 %v1545_v48  ;;  %v1391_v46 = vunpack.c.h.s8.bf16 %v1227_v24  ;;  %v1324_v16 = vunpack.c.l.s8.bf16 %v1196_v15  ;;  %v1255_v51 = vld [vmem:[%s3053_s16 + $0x1f0] sm:$0xff]  ;;  %v1220_v28 = vld [vmem:[%s3053_s16 + $0xd8] sm:$0xff] }
 0x24d   : > { %1741 = vmatprep.subr.bf16.mxu0 %v1352_v53  ;;  %1782 = vmatprep.subr.bf16.mxu1 %v1416_v60  ;;  %v1388_v22 = vunpack.c.l.s8.bf16 %v1228_v1  ;;  %v1323_v45 = vunpack.c.l.s8.bf16 %v1195_v30  ;;  %v1387_v48 = vunpack.c.l.s8.bf16 %v1227_v24  ;;  %v1384_v49 = vunpack.c.h.s8.bf16 %v1224_v41  ;;  %v1247_v23 = vld [vmem:[%s3053_s16 + $0x1b0] sm:$0xff]  ;;  %v1244_v11 = vld [vmem:[%s3053_s16 + $0x198] sm:$0xff] }
 0x24e   : > { %1691 = vmatprep.mubr.bf16.mxu0 %v3528_v62  ;;  %1732 = vmatprep.mubr.bf16.mxu1 %v3530_v58  ;;  %v1448_v35 = vunpack.c.h.s8.bf16 %v1256_v34  ;;  %v1383_v53 = vunpack.c.h.s8.bf16 %v1223_v50  ;;  %v1447_v60 = vunpack.c.h.s8.bf16 %v1255_v51  ;;  %v1380_v37 = vunpack.c.l.s8.bf16 %v1224_v41  ;;  %v1243_v1 = vld [vmem:[%s3053_s16 + $0x190] sm:$0xff]  ;;  %v1304_v24 = vld [vmem:[%s3053_s16 + $0x378] sm:$0xff] }
 0x24f   : > { %1692 = vmatmul.mubr.bf16.vlgmr.msra.gmra.mxu0 %v3532_v47  ;;  %1733 = vmatmul.mubr.bf16.vlgmr.msra.gmra.mxu1 %v3534_v33  ;;  %v1444_v10 = vunpack.c.l.s8.bf16 %v1256_v34  ;;  %v1436_v39 = vunpack.c.l.s8.bf16 %v1252_v6  ;;  %v1424_v15 = vunpack.c.h.s8.bf16 %v1244_v11  ;;  %v1420_v30 = vunpack.c.l.s8.bf16 %v1244_v11  ;;  %v1303_v34 = vld [vmem:[%s3053_s16 + $0x370] sm:$0xff] }
 0x250   : > { %1742 = vmatpush1.bf16.msra.mxu0 %v1351_v27  ;;  %1773 = vmatprep.mubr.bf16.mxu0 %v3470_v9  ;;  %v1407_v9 = vunpack.c.h.s8.bf16 %v1235_v61  ;;  %v1379_v27 = vunpack.c.l.s8.bf16 %v1223_v50  ;;  %v1248_v61 = vld [vmem:[%s3053_s16 + $0x1b8] sm:$0xff]  ;;  %v1544_v41 = vunpack.c.h.s8.bf16 %v1304_v24  ;;  %v1299_v6 = vld [vmem:[%s3053_s16 + $0x350] sm:$0xff] }
 0x251   : > { %1783 = vmatpush1.bf16.msra.mxu1 %v1415_v54  ;;  %1814 = vmatprep.mubr.bf16.mxu1 %v3472_v21  ;;  %v1200_v21 = vld [vmem:[%s3053_s16 + $0x38] sm:$0xff]  ;;  %v1443_v54 = vunpack.c.l.s8.bf16 %v1255_v51  ;;  %v1428_v4 = vunpack.c.l.s8.bf16 %v1248_v61 }
 0x252   : > { %1743 = vmatprep.subr.bf16.mxu0 %v1348_v12  ;;  %1784 = vmatprep.subr.bf16.mxu1 %v1412_v19  ;;  %v1336_v5 = vunpack.c.h.s8.bf16 %v1200_v21  ;;  %v1332_v8 = vunpack.c.l.s8.bf16 %v1200_v21  ;;  %v1376_v12 = vunpack.c.h.s8.bf16 %v1220_v28  ;;  %v1219_v19 = vld [vmem:[%s3053_s16 + $0xd0] sm:$0xff]  ;;  %v1432_v21 = vunpack.c.h.s8.bf16 %v1248_v61  ;;  %v1268_v50 = vld [vmem:[%s3053_s16 + $0x258] sm:$0xff] }
 0x253   : > { %v1300_v51 = vld [vmem:[%s3053_s16 + $0x358] sm:$0xff] }
 0x254   : > { %1744 = vmatpush1.bf16.msra.mxu0 %v1347_v55  ;;  %v1375_v55 = vunpack.c.h.s8.bf16 %v1219_v19 }
 0x255   : > { %1785 = vmatpush1.bf16.msra.mxu1 %v1411_v29  ;;  %1745 = vmatprep.subr.bf16.mxu0 %v1344_v57  ;;  %v1439_v29 = vunpack.c.h.s8.bf16 %v1251_v52  ;;  %v1372_v57 = vunpack.c.l.s8.bf16 %v1220_v28  ;;  %v1536_v28 = vunpack.c.h.s8.bf16 %v1300_v51 }
 0x256   : > { %1786 = vmatprep.subr.bf16.mxu1 %v1408_v56  ;;  %v1216_v56 = vld [vmem:[%s3053_s16 + $0xb8] sm:$0xff] }
 0x258   : > { %1746 = vmatpush1.bf16.msra.mxu0 %v1343_v40  ;;  %v1371_v40 = vunpack.c.l.s8.bf16 %v1219_v19 }
 0x259   : > { %1787 = vmatpush1.bf16.msra.mxu1 %v1407_v9  ;;  %1747 = vmatprep.subr.bf16.mxu0 %v1340_v0  ;;  %v1435_v9 = vunpack.c.l.s8.bf16 %v1251_v52  ;;  %v1368_v0 = vunpack.c.h.s8.bf16 %v1216_v56  ;;  %v1263_v52 = vld [vmem:[%s3053_s16 + $0x230] sm:$0xff] }
 0x25a   : > { %1788 = vmatprep.subr.bf16.mxu1 %v1404_v42  ;;  %v1215_v42 = vld [vmem:[%s3053_s16 + $0xb0] sm:$0xff] }
 0x25c   : > { %1748 = vmatpush1.bf16.msra.mxu0 %v1339_v3  ;;  %v1367_v3 = vunpack.c.h.s8.bf16 %v1215_v42 }
 0x25d   : > { %1789 = vmatpush1.bf16.msra.mxu1 %v1403_v59  ;;  %1749 = vmatprep.subr.bf16.mxu0 %v1336_v5  ;;  %v1431_v59 = vunpack.c.h.s8.bf16 %v1247_v23  ;;  %v1364_v5 = vunpack.c.l.s8.bf16 %v1216_v56 }
 0x25e   : > { %1790 = vmatprep.subr.bf16.mxu1 %v1400_v7  ;;  %v1212_v7 = vld [vmem:[%s3053_s16 + $0x98] sm:$0xff] }
 0x260   : > { %1750 = vmatpush1.bf16.msra.mxu0 %v1335_v2  ;;  %v1363_v2 = vunpack.c.l.s8.bf16 %v1215_v42 }
 0x261   : > { %1791 = vmatpush1.bf16.msra.mxu1 %v1399_v13  ;;  %1751 = vmatprep.subr.bf16.mxu0 %v1332_v8  ;;  %v1427_v13 = vunpack.c.l.s8.bf16 %v1247_v23  ;;  %v1360_v8 = vunpack.c.h.s8.bf16 %v1212_v7  ;;  %v1259_v23 = vld [vmem:[%s3053_s16 + $0x210] sm:$0xff] }
 0x262   : > { %1792 = vmatprep.subr.bf16.mxu1 %v1396_v14  ;;  %v1211_v14 = vld [vmem:[%s3053_s16 + $0x90] sm:$0xff] }
 0x264   : > { %1752 = vmatpush1.bf16.msra.mxu0 %v1331_v17  ;;  %v1359_v17 = vunpack.c.h.s8.bf16 %v1211_v14 }
 0x265   : > { %1793 = vmatpush1.bf16.msra.mxu1 %v1395_v44  ;;  %1753 = vmatprep.subr.bf16.mxu0 %v1328_v18  ;;  %v1423_v44 = vunpack.c.h.s8.bf16 %v1243_v1  ;;  %v1356_v18 = vunpack.c.l.s8.bf16 %v1212_v7 }
 0x266   : > { %1794 = vmatprep.subr.bf16.mxu1 %v1392_v25  ;;  %v1272_v25 = vld [vmem:[%s3053_s16 + $0x278] sm:$0xff] }
 0x268   : > { %1754 = vmatpush1.bf16.msra.mxu0 %v1327_v26  ;;  %v1355_v26 = vunpack.c.l.s8.bf16 %v1211_v14 }
 0x269   : > { %1795 = vmatpush1.bf16.msra.mxu1 %v1391_v46  ;;  %1755 = vmatprep.subr.bf16.mxu0 %v1324_v16  ;;  %v1419_v46 = vunpack.c.l.s8.bf16 %v1243_v1  ;;  %v1480_v16 = vunpack.c.h.s8.bf16 %v1272_v25  ;;  %v1287_v1 = vld [vmem:[%s3053_s16 + $0x2f0] sm:$0xff] }
 0x26a   : > { %1796 = vmatprep.subr.bf16.mxu1 %v1388_v22  ;;  %v1271_v22 = vld [vmem:[%s3053_s16 + $0x270] sm:$0xff] }
 0x26c   : > { %1756 = vmatpush1.bf16.msra.mxu0 %v1323_v45  ;;  %v1479_v45 = vunpack.c.h.s8.bf16 %v1271_v22 }
 0x26d   : > { %1797 = vmatpush1.bf16.msra.mxu1 %v1387_v48  ;;  %1757 = vmatprep.subr.bf16.mxu0 %v1384_v49  ;;  %v1543_v48 = vunpack.c.h.s8.bf16 %v1303_v34  ;;  %v1476_v49 = vunpack.c.l.s8.bf16 %v1272_v25 }
 0x26e   : > { %1798 = vmatprep.subr.bf16.mxu1 %v1448_v35  ;;  %v1540_v35 = vunpack.c.l.s8.bf16 %v1304_v24 }
 0x270   : > { %1758 = vmatpush2.bf16.msra.mxu0 %v1383_v53  ;;  %v1475_v53 = vunpack.c.l.s8.bf16 %v1271_v22 }
 0x271   : > { %1799 = vmatpush2.bf16.msra.mxu1 %v1447_v60  ;;  %1759 = vmatprep.subr.bf16.mxu0 %v1380_v37  ;;  %v1539_v60 = vunpack.c.l.s8.bf16 %v1303_v34  ;;  %v1472_v37 = vunpack.c.h.s8.bf16 %v1268_v50  ;;  %v1283_v34 = vld [vmem:[%s3053_s16 + $0x2d0] sm:$0xff] }
 0x272   : > { %1800 = vmatprep.subr.bf16.mxu1 %v1444_v10  ;;  %v1267_v10 = vld [vmem:[%s3053_s16 + $0x250] sm:$0xff] }
 0x273   : > { %v1467_v19 = vunpack.c.l.s8.bf16 %v1267_v10 }
 0x274   : > { %1760 = vmatpush2.bf16.msra.mxu0 %v1379_v27  ;;  %v1532_v27 = vunpack.c.l.s8.bf16 %v1300_v51 }
 0x275   : > { %1801 = vmatpush2.bf16.msra.mxu1 %v1443_v54  ;;  %1761 = vmatprep.subr.bf16.mxu0 %v1376_v12  ;;  %v1264_v54 = vld [vmem:[%s3053_s16 + $0x238] sm:$0xff] }
 0x276   : > { %1802 = vmatprep.subr.bf16.mxu1 %v1440_v20  ;;  %v1296_v12 = vld [vmem:[%s3053_s16 + $0x338] sm:$0xff]  ;;  %v1464_v20 = vunpack.c.h.s8.bf16 %v1264_v54  ;;  %v1460_v56 = vunpack.c.l.s8.bf16 %v1264_v54 }
 0x277   : > { %v1524_v61 = vunpack.c.l.s8.bf16 %v1296_v12 }
 0x278   : > { %1762 = vmatpush2.bf16.msra.mxu0 %v1375_v55  ;;  %v1528_v55 = vunpack.c.h.s8.bf16 %v1296_v12 }
 0x279   : > { %1803 = vmatpush2.bf16.msra.mxu1 %v1439_v29  ;;  %1763 = vmatprep.subr.bf16.mxu0 %v1372_v57  ;;  %v1295_v29 = vld [vmem:[%s3053_s16 + $0x330] sm:$0xff]  ;;  %v1463_v57 = vunpack.c.h.s8.bf16 %v1263_v52 }
 0x27a   : > { %1804 = vmatprep.subr.bf16.mxu1 %v1436_v39  ;;  %v1527_v39 = vunpack.c.h.s8.bf16 %v1295_v29  ;;  %v1523_v42 = vunpack.c.l.s8.bf16 %v1295_v29  ;;  %v1275_v29 = vld [vmem:[%s3053_s16 + $0x290] sm:$0xff] }
 0x27c   : > { %1764 = vmatpush2.bf16.msra.mxu0 %v1371_v40  ;;  %v1260_v40 = vld [vmem:[%s3053_s16 + $0x218] sm:$0xff] }
 0x27d   : > { %1805 = vmatpush2.bf16.msra.mxu1 %v1435_v9  ;;  %1765 = vmatprep.subr.bf16.mxu0 %v1368_v0  ;;  %v1292_v9 = vld [vmem:[%s3053_s16 + $0x318] sm:$0xff]  ;;  %v1459_v0 = vunpack.c.l.s8.bf16 %v1263_v52  ;;  %v1452_v7 = vunpack.c.l.s8.bf16 %v1260_v40 }
 0x27e   : > { %1806 = vmatprep.subr.bf16.mxu1 %v1432_v21  ;;  %v1456_v21 = vunpack.c.h.s8.bf16 %v1260_v40  ;;  %v1516_v11 = vunpack.c.l.s8.bf16 %v1292_v9 }
 0x280   : > { %1766 = vmatpush2.bf16.msra.mxu0 %v1367_v3  ;;  %v1520_v3 = vunpack.c.h.s8.bf16 %v1292_v9 }
 0x281   : > { %1807 = vmatpush2.bf16.msra.mxu1 %v1431_v59  ;;  %1767 = vmatprep.subr.bf16.mxu0 %v1364_v5  ;;  %v1291_v59 = vld [vmem:[%s3053_s16 + $0x310] sm:$0xff]  ;;  %v1455_v5 = vunpack.c.h.s8.bf16 %v1259_v23 }
 0x282   : > { %1808 = vmatprep.subr.bf16.mxu1 %v1428_v4  ;;  %v1519_v4 = vunpack.c.h.s8.bf16 %v1291_v59  ;;  %v1515_v14 = vunpack.c.l.s8.bf16 %v1291_v59 }
 0x284   : > { %1768 = vmatpush2.bf16.msra.mxu0 %v1363_v2  ;;  %v1288_v2 = vld [vmem:[%s3053_s16 + $0x2f8] sm:$0xff] }
 0x285   : > { %1809 = vmatpush2.bf16.msra.mxu1 %v1427_v13  ;;  %1769 = vmatprep.subr.bf16.mxu0 %v1360_v8  ;;  %v1320_v13 = vld [vmem:[%s3053_s16 + $0x3f8] sm:$0xff]  ;;  %v1451_v8 = vunpack.c.l.s8.bf16 %v1259_v23  ;;  %v1508_v25 = vunpack.c.l.s8.bf16 %v1288_v2 }
 0x286   : > { %1810 = vmatprep.subr.bf16.mxu1 %v1424_v15  ;;  %v1512_v15 = vunpack.c.h.s8.bf16 %v1288_v2  ;;  %v1572_v24 = vunpack.c.l.s8.bf16 %v1320_v13 }
 0x288   : > { %1770 = vmatpush2.bf16.msra.mxu0 %v1359_v17  ;;  %v1576_v17 = vunpack.c.h.s8.bf16 %v1320_v13 }
 0x289   : > { %1811 = vmatpush2.bf16.msra.mxu1 %v1423_v44  ;;  %1771 = vmatprep.subr.bf16.mxu0 %v1356_v18  ;;  %v1319_v44 = vld [vmem:[%s3053_s16 + $0x3f0] sm:$0xff]  ;;  %v1511_v18 = vunpack.c.h.s8.bf16 %v1287_v1 }
 0x28a   : > { %1812 = vmatprep.subr.bf16.mxu1 %v1420_v30  ;;  %v1575_v30 = vunpack.c.h.s8.bf16 %v1319_v44  ;;  %v1571_v22 = vunpack.c.l.s8.bf16 %v1319_v44 }
 0x28c   : > { %1772 = vmatpush2.bf16.msra.mxu0 %v1355_v26  ;;  %v1284_v26 = vld [vmem:[%s3053_s16 + $0x2d8] sm:$0xff] }
 0x28d   : > { %1813 = vmatpush2.bf16.msra.mxu1 %v1419_v46  ;;  %1823 = vmatprep.subr.bf16.mxu0 %v1480_v16  ;;  %v1316_v46 = vld [vmem:[%s3053_s16 + $0x3d8] sm:$0xff]  ;;  %v1507_v16 = vunpack.c.l.s8.bf16 %v1287_v1  ;;  %v1965_v1 = vld [vmem:[%s3060_s12 + $0x10] sm:$0xff] }
 0x28e   : > { %1864 = vmatprep.subr.bf16.mxu1 %v1544_v41  ;;  %v1504_v41 = vunpack.c.h.s8.bf16 %v1284_v26  ;;  %v1564_v51 = vunpack.c.l.s8.bf16 %v1316_v46  ;;  %v1984_v44 = vunpack.c.h.s8.bf16 %v1965_v1 }
 0x28f   : > { %1774 = vmatmul.mubr.bf16.vlgmr.msra.gmra.mxu0 %v3474_v38  ;;  %v1471_v38 = vunpack.c.h.s8.bf16 %v1267_v10 }
 0x290   : > { %1815 = vmatmul.mubr.bf16.vlgmr.msra.gmra.mxu1 %v3476_v63  ;;  %1824 = vmatpush1.bf16.msra.mxu0 %v1479_v45  ;;  %v1535_v63 = vunpack.c.h.s8.bf16 %v1299_v6  ;;  %v1568_v45 = vunpack.c.h.s8.bf16 %v1316_v46 }
 0x291   : > { %1855 = vmatprep.mubr.bf16.mxu0 %v3528_v62  ;;  %1865 = vmatpush1.bf16.msra.mxu1 %v1543_v48  ;;  %v1468_v62 = vunpack.c.l.s8.bf16 %v1268_v50  ;;  %v1315_v48 = vld [vmem:[%s3053_s16 + $0x3d0] sm:$0xff] }
 0x292   : > { %1896 = vmatprep.mubr.bf16.mxu1 %v3530_v58  ;;  %1825 = vmatprep.subr.bf16.mxu0 %v1476_v49  ;;  %v1531_v58 = vunpack.c.l.s8.bf16 %v1299_v6  ;;  %v1503_v49 = vunpack.c.h.s8.bf16 %v1283_v34  ;;  %v1567_v50 = vunpack.c.h.s8.bf16 %v1315_v48  ;;  %v1563_v10 = vunpack.c.l.s8.bf16 %v1315_v48  ;;  %v1279_v6 = vld [vmem:[%s3053_s16 + $0x2b0] sm:$0xff]  ;;  %v1964_v48 = vld [vmem:[%s3060_s12 + $0x8] sm:$0xff] }
 0x293   : > { %1866 = vmatprep.subr.bf16.mxu1 %v1540_v35  ;;  %v1500_v35 = vunpack.c.l.s8.bf16 %v1284_v26  ;;  %v1974_v26 = vld [vmem:[%s3060_s12 + $0x58] sm:$0xff] }
 0x294   : > { %1826 = vmatpush1.bf16.msra.mxu0 %v1475_v53  ;;  %v1280_v53 = vld [vmem:[%s3053_s16 + $0x2b8] sm:$0xff] }
 0x295   : > { %1867 = vmatpush1.bf16.msra.mxu1 %v1539_v60  ;;  %1827 = vmatprep.subr.bf16.mxu0 %v1472_v37  ;;  %v1312_v60 = vld [vmem:[%s3053_s16 + $0x3b8] sm:$0xff]  ;;  %v1499_v37 = vunpack.c.l.s8.bf16 %v1283_v34  ;;  %v1492_v54 = vunpack.c.l.s8.bf16 %v1280_v53  ;;  %v1977_v34 = vld [vmem:[%s3060_s12 + $0x70] sm:$0xff] }
 0x296   : > { %1868 = vmatprep.subr.bf16.mxu1 %v1536_v28  ;;  %v1496_v28 = vunpack.c.h.s8.bf16 %v1280_v53  ;;  %v1556_v12 = vunpack.c.l.s8.bf16 %v1312_v60 }
 0x298   : > { %1828 = vmatpush1.bf16.msra.mxu0 %v1471_v38  ;;  %v1560_v38 = vunpack.c.h.s8.bf16 %v1312_v60  ;;  %v1967_v60 = vld [vmem:[%s3060_s12 + $0x20] sm:$0xff] }
 0x299   : > { %1869 = vmatpush1.bf16.msra.mxu1 %v1535_v63  ;;  %1829 = vmatprep.subr.bf16.mxu0 %v1468_v62  ;;  %v1311_v63 = vld [vmem:[%s3053_s16 + $0x3b0] sm:$0xff]  ;;  %v1495_v62 = vunpack.c.h.s8.bf16 %v1279_v6 }
 0x29a   : > { %1870 = vmatprep.subr.bf16.mxu1 %v1532_v27  ;;  %v1559_v27 = vunpack.c.h.s8.bf16 %v1311_v63  ;;  %v1555_v52 = vunpack.c.l.s8.bf16 %v1311_v63 }
 0x29c   : > { %1830 = vmatpush1.bf16.msra.mxu0 %v1467_v19  ;;  %v1276_v19 = vld [vmem:[%s3053_s16 + $0x298] sm:$0xff] }
 0x29d   : > { %1871 = vmatpush1.bf16.msra.mxu1 %v1531_v58  ;;  %1831 = vmatprep.subr.bf16.mxu0 %v1464_v20  ;;  %v1308_v58 = vld [vmem:[%s3053_s16 + $0x398] sm:$0xff]  ;;  %v1491_v20 = vunpack.c.l.s8.bf16 %v1279_v6  ;;  %v1484_v40 = vunpack.c.l.s8.bf16 %v1276_v19  ;;  %v1988_v6 = vunpack.c.h.s8.bf16 %v1967_v60 }
 0x29e   : > { %1872 = vmatprep.subr.bf16.mxu1 %v1528_v55  ;;  %v1488_v55 = vunpack.c.h.s8.bf16 %v1276_v19  ;;  %v1548_v9 = vunpack.c.l.s8.bf16 %v1308_v58  ;;  %v1976_v19 = vld [vmem:[%s3060_s12 + $0x68] sm:$0xff] }
 0x2a0   : > { %1832 = vmatpush1.bf16.msra.mxu0 %v1463_v57  ;;  %v1552_v57 = vunpack.c.h.s8.bf16 %v1308_v58 }
 0x2a1   : > { %1873 = vmatpush1.bf16.msra.mxu1 %v1527_v39  ;;  %1833 = vmatprep.subr.bf16.mxu0 %v1460_v56  ;;  %v1307_v39 = vld [vmem:[%s3053_s16 + $0x390] sm:$0xff]  ;;  %v1487_v56 = vunpack.c.h.s8.bf16 %v1275_v29 }
 0x2a2   : > { %1874 = vmatprep.subr.bf16.mxu1 %v1524_v61  ;;  %v1551_v61 = vunpack.c.h.s8.bf16 %v1307_v39 }
 0x2a4   : > { %1834 = vmatpush1.bf16.msra.mxu0 %v1459_v0  ;;  %v1970_v0 = vld [vmem:[%s3060_s12 + $0x38] sm:$0xff] }
 0x2a5   : > { %1875 = vmatpush1.bf16.msra.mxu1 %v1523_v42  ;;  %1835 = vmatprep.subr.bf16.mxu0 %v1456_v21  ;;  %v1483_v42 = vunpack.c.l.s8.bf16 %v1275_v29  ;;  %v1547_v21 = vunpack.c.l.s8.bf16 %v1307_v39  ;;  %v1994_v23 = vunpack.c.h.s8.bf16 %v1970_v0  ;;  %v1972_v29 = vld [vmem:[%s3060_s12 + $0x48] sm:$0xff] }
 0x2a6   : > { %1876 = vmatprep.subr.bf16.mxu1 %v1520_v3  ;;  %v1966_v3 = vld [vmem:[%s3060_s12 + $0x18] sm:$0xff] }
 0x2a7   : > { %v1986_v59 = vunpack.c.h.s8.bf16 %v1966_v3  ;;  %v1985_v13 = vunpack.c.l.s8.bf16 %v1966_v3 }
 0x2a8   : > { %1836 = vmatpush1.bf16.msra.mxu0 %v1455_v5  ;;  %v1993_v5 = vunpack.c.l.s8.bf16 %v1970_v0 }
 0x2a9   : > { %1877 = vmatpush1.bf16.msra.mxu1 %v1519_v4  ;;  %1837 = vmatprep.subr.bf16.mxu0 %v1452_v7  ;;  %v1969_v4 = vld [vmem:[%s3060_s12 + $0x30] sm:$0xff] }
 0x2aa   : > { %1878 = vmatprep.subr.bf16.mxu1 %v1516_v11 }
 0x2ac   : > { %1838 = vmatpush1.bf16.msra.mxu0 %v1451_v8 }
 0x2ad   : > { %1879 = vmatpush1.bf16.msra.mxu1 %v1515_v14  ;;  %1839 = vmatprep.subr.bf16.mxu0 %v1512_v15  ;;  %v1992_v15 = vunpack.c.h.s8.bf16 %v1969_v4 }
 0x2ae   : > { %1880 = vmatprep.subr.bf16.mxu1 %v1576_v17 }
 0x2b0   : > { %1840 = vmatpush2.bf16.msra.mxu0 %v1511_v18 }
 0x2b1   : > { %1881 = vmatpush2.bf16.msra.mxu1 %v1575_v30  ;;  %1841 = vmatprep.subr.bf16.mxu0 %v1508_v25  ;;  %v1991_v30 = vunpack.c.l.s8.bf16 %v1969_v4  ;;  %v1968_v25 = vld [vmem:[%s3060_s12 + $0x28] sm:$0xff] }
 0x2b2   : > { %1882 = vmatprep.subr.bf16.mxu1 %v1572_v24  ;;  %v1978_v24 = vld [vmem:[%s3060_s12 + $0x78] sm:$0xff]  ;;  %v1989_v53 = vunpack.c.l.s8.bf16 %v1968_v25 }
 0x2b3   : > { %v2010_v46 = vunpack.c.h.s8.bf16 %v1978_v24 }
 0x2b4   : > { %1842 = vmatpush2.bf16.msra.mxu0 %v1507_v16  ;;  %v2002_v16 = vunpack.c.h.s8.bf16 %v1974_v26 }
 0x2b5   : > { %1883 = vmatpush2.bf16.msra.mxu1 %v1571_v22  ;;  %1843 = vmatprep.subr.bf16.mxu0 %v1504_v41  ;;  %v2009_v22 = vunpack.c.l.s8.bf16 %v1978_v24  ;;  %v1983_v41 = vunpack.c.l.s8.bf16 %v1965_v1 }
 0x2b6   : > { %1884 = vmatprep.subr.bf16.mxu1 %v1568_v45  ;;  %v1990_v45 = vunpack.c.h.s8.bf16 %v1968_v25 }
 0x2b8   : > { %1844 = vmatpush2.bf16.msra.mxu0 %v1503_v49  ;;  %v2001_v49 = vunpack.c.l.s8.bf16 %v1974_v26 }
 0x2b9   : > { %1885 = vmatpush2.bf16.msra.mxu1 %v1567_v50  ;;  %1845 = vmatprep.subr.bf16.mxu0 %v1500_v35  ;;  %v2008_v50 = vunpack.c.h.s8.bf16 %v1977_v34  ;;  %v1973_v35 = vld [vmem:[%s3060_s12 + $0x50] sm:$0xff] }
 0x2ba   : > { %1886 = vmatprep.subr.bf16.mxu1 %v1564_v51  ;;  %v1982_v51 = vunpack.c.h.s8.bf16 %v1964_v48  ;;  %v1999_v63 = vunpack.c.l.s8.bf16 %v1973_v35 }
 0x2bc   : > { %1846 = vmatpush2.bf16.msra.mxu0 %v1499_v37  ;;  %v2000_v37 = vunpack.c.h.s8.bf16 %v1973_v35  ;;  %v2828_v35 = vmov 0.0  }
 0x2bd   : > { %1887 = vmatpush2.bf16.msra.mxu1 %v1563_v10  ;;  %1847 = vmatprep.subr.bf16.mxu0 %v1496_v28  ;;  %v2007_v10 = vunpack.c.l.s8.bf16 %v1977_v34  ;;  %v1981_v28 = vunpack.c.l.s8.bf16 %v1964_v48 }
 0x2be   : > { %1888 = vmatprep.subr.bf16.mxu1 %v1560_v38  ;;  %v1963_v38 = vld [vmem:[%s3060_s12] sm:$0xff] }
 0x2c0   : > { %1848 = vmatpush2.bf16.msra.mxu0 %v1495_v62  ;;  %v1980_v62 = vunpack.c.h.s8.bf16 %v1963_v38 }
 0x2c1   : > { %1889 = vmatpush2.bf16.msra.mxu1 %v1559_v27  ;;  %1849 = vmatprep.subr.bf16.mxu0 %v1492_v54  ;;  %v1987_v27 = vunpack.c.l.s8.bf16 %v1967_v60  ;;  %v1979_v54 = vunpack.c.l.s8.bf16 %v1963_v38  ;;  %v2628_v60 = vld [vmem:[%s3068_s11 + $0x20] sm:$0xff]  }
 0x2c2   : > { %1890 = vmatprep.subr.bf16.mxu1 %v1556_v12  ;;  %v3627_v12 = vld [vmem:[%s3066_s2 + $0x11] ss:$2 sm:$0xf] }
 0x2c3   : > { %v1917_v38 = vrot.slane %v3627_v12, %v3438_v36 }
 0x2c4   : > { %1850 = vmatpush2.bf16.msra.mxu0 %v1491_v20  ;;  %v3631_v20 = vld [vmem:[%s3066_s2 + $0x10] ss:$2 sm:$0xf] }
 0x2c5   : > { %1891 = vmatpush2.bf16.msra.mxu1 %v1555_v52  ;;  %1851 = vmatprep.subr.bf16.mxu0 %v1488_v55  ;;  %v2006_v55 = vunpack.c.h.s8.bf16 %v1976_v19 }
 0x2c6   : > { %1892 = vmatprep.subr.bf16.mxu1 %v1552_v57 }
 0x2c8   : > { %1852 = vmatpush2.bf16.msra.mxu0 %v1487_v56  ;;  %v1909_v56 = vrot.slane %v3627_v12, %v3435_v32 }
 0x2c9   : > { %1893 = vmatpush2.bf16.msra.mxu1 %v1551_v61  ;;  %1853 = vmatprep.subr.bf16.mxu0 %v1484_v40  ;;  %v1998_v61 = vunpack.c.h.s8.bf16 %v1972_v29 }
 0x2ca   : > { %1894 = vmatprep.subr.bf16.mxu1 %v1548_v9 }
 0x2cc   : > { %1854 = vmatpush2.bf16.msra.mxu0 %v1483_v42  ;;  %v1934_v42 = vrot.slane %v3631_v20, %v3435_v32 }
 0x2cd   : > { %1895 = vmatpush2.bf16.msra.mxu1 %v1547_v21  ;;  %2473 = vmatprep.subr.bf16.mxu0 %v1994_v23  ;;  %v1913_v23 = vrot.slane %v3627_v12, %v3444_v31 }
 0x2ce   : > { %2495 = vmatprep.subr.bf16.mxu1 %v2010_v46 }
 0x2cf   : > { %1856 = vmatmul.mubr.bf16.vlgmr.msra.gmra.mxu0 %v3532_v47  ;;  %v1611_v7 = vpop.f32.mrf.mxu0  ;;  %v1652_v11 = vpop.f32.mrf.mxu1 }
 0x2d0   : > { %1897 = vmatmul.mubr.bf16.vlgmr.msra.gmra.mxu1 %v3534_v33  ;;  %v3611_v2 = vadd.f32 %v1652_v11, %v1611_v7  ;;  %2474 = vmatpush3.bf16.msra.mxu0 %v1986_v59  ;;  %v1938_v11 = vrot.slane %v3631_v20, %v3444_v31 }
 0x2d1   : > { %v3613_v8 = vpop.f32.mrf.mxu0  ;;  %v3615_v14 = vpop.f32.mrf.mxu1  ;;  %2475 = vmatprep.subr.bf16.mxu0 %v1993_v5  ;;  %2496 = vmatpush3.bf16.msra.mxu1 %v2002_v16  ;;  %v2005_v5 = vunpack.c.l.s8.bf16 %v1976_v19 }
 0x2d2   : > { %2497 = vmatprep.subr.bf16.mxu1 %v2009_v22  ;;  %v1655_v57 = vadd.f32 %v3615_v14, %v3613_v8 }
 0x2d3   : > { %v1615_v17 = vpop.f32.mrf.mxu0  ;;  %v1656_v47 = vpop.f32.mrf.mxu1 }
 0x2d4   : > { %2476 = vmatpush3.bf16.msra.mxu0 %v1985_v13  ;;  %v1971_v17 = vld [vmem:[%s3060_s12 + $0x40] sm:$0xff] }
 0x2d5   : > { %v1616_v33 = vpop.f32.mrf.mxu0  ;;  %v1657_v18 = vpop.f32.mrf.mxu1  ;;  %2477 = vmatprep.subr.bf16.mxu0 %v1992_v15  ;;  %2498 = vmatpush3.bf16.msra.mxu1 %v2001_v49  ;;  %v1975_v15 = vld [vmem:[%s3060_s12 + $0x60] sm:$0xff]  ;;  %v1995_v25 = vunpack.c.l.s8.bf16 %v1971_v17 }
 0x2d6   : > { %2499 = vmatprep.subr.bf16.mxu1 %v2008_v50  ;;  %v2004_v1 = vunpack.c.h.s8.bf16 %v1975_v15  ;;  %v2625_v50 = vld [vmem:[%s3068_s11 + $0x38] sm:$0xff]  }
 0x2d8   : > { %2478 = vmatpush3.bf16.msra.mxu0 %v1984_v44  ;;  %v1996_v44 = vunpack.c.h.s8.bf16 %v1971_v17 }
 0x2d9   : > { %2479 = vmatprep.subr.bf16.mxu0 %v1991_v30  ;;  %2500 = vmatpush3.bf16.msra.mxu1 %v2000_v37  ;;  %v2003_v30 = vunpack.c.l.s8.bf16 %v1975_v15 }
 0x2da   : > { %2501 = vmatprep.subr.bf16.mxu1 %v2007_v10 }
 0x2dc   : > { %2480 = vmatpush3.bf16.msra.mxu0 %v1983_v41 }
 0x2dd   : > { %2481 = vmatprep.subr.bf16.mxu0 %v1990_v45  ;;  %2502 = vmatpush3.bf16.msra.mxu1 %v1999_v63 }
 0x2de   : > { %2503 = vmatprep.subr.bf16.mxu1 %v2006_v55 }
 0x2e0   : > { %2482 = vmatpush3.bf16.msra.mxu0 %v1982_v51  ;;  %v2626_v51 = vld [vmem:[%s3068_s11 + $0x30] sm:$0xff]  }
 0x2e1   : > { %2483 = vmatprep.subr.bf16.mxu0 %v1989_v53  ;;  %2504 = vmatpush3.bf16.msra.mxu1 %v1998_v61  ;;  %v2627_v53 = vld [vmem:[%s3068_s11 + $0x28] sm:$0xff]  }
 0x2e2   : > { %2505 = vmatprep.subr.bf16.mxu1 %v2005_v5  ;;  %v2630_v5 = vld [vmem:[%s3068_s11 + $0x10] sm:$0xff]  }
 0x2e4   : > { %2484 = vmatpush3.bf16.msra.mxu0 %v1981_v28 }
 0x2e5   : > { %2485 = vmatprep.subr.bf16.mxu0 %v1988_v6 }
 0x2e8   : > { %2486 = vmatpush3.bf16.msra.mxu0 %v1980_v62 }
 0x2e9   : > { %2487 = vmatprep.subr.bf16.mxu0 %v1987_v27  ;;  %v1942_v27 = vrot.slane %v3631_v20, %v3438_v36 }
 0x2ec   : > { %2488 = vmatpush3.bf16.msra.mxu0 %v1979_v54 }
 0x2ed   : > { %2526 = vmatprep.subr.bf16.mxu0 %v2828_v35 }
 0x30f   : > { %v1693_v58 = vpop.f32.mrf.mxu0  ;;  %v1734_v52 = vpop.f32.mrf.mxu1 }
 0x310   : > { %v1694_v39 = vadd.f32 %v1693_v58, %v3611_v2  ;;  %v1997_v2 = vunpack.c.l.s8.bf16 %v1972_v29  ;;  %v1921_v58 = vrot.slane %v3627_v12, %v3447_v43 }
 0x311   : > { %v1695_v40 = vpop.f32.mrf.mxu0  ;;  %v1736_v9 = vpop.f32.mrf.mxu1 }
 0x312   : > { %v1735_v0 = vadd.f32 %v1734_v52, %v1694_v39  ;;  %v1696_v21 = vadd.f32 %v1695_v40, %v1655_v57  ;;  %2506 = vmatpush3.bf16.msra.mxu1 %v1997_v2  ;;  %v1946_v57 = vrot.slane %v3631_v20, %v3447_v43 }
 0x313   : > { %v1697_v3 = vpop.f32.mrf.mxu0  ;;  %v1738_v59 = vpop.f32.mrf.mxu1  ;;  %2507 = vmatprep.subr.bf16.mxu1 %v2004_v1  ;;  %v2394_v1 = vld [vmem:[%s3066_s2 + $0x18] ss:$0 sm:$0xff] }
 0x314   : > { %v1926_v4 = vmul.f32 %v1909_v56, %v1735_v0  ;;  %v1737_v7 = vadd.f32 %v1736_v9, %v1696_v21  ;;  %v2629_v3 = vld [vmem:[%s3068_s11 + $0x18] sm:$0xff]  }
 0x315   : > { %v1698_v13 = vpop.f32.mrf.mxu0  ;;  %v1739_v8 = vpop.f32.mrf.mxu1 }
 0x316   : > { %v1951_v32 = vadd.f32 %v1934_v42, %v1926_v4  ;;  %v1927_v14 = vmul.f32 %v1913_v23, %v1737_v7  ;;  %2508 = vmatpush3.bf16.msra.mxu1 %v1996_v44  ;;  %v2631_v7 = vld [vmem:[%s3068_s11 + $0x8] sm:$0xff]  }
 0x317   : > { %2509 = vmatprep.subr.bf16.mxu1 %v2003_v30  ;;  %v2395_v30 = vld [vmem:[%s3066_s2 + $0x1a] ss:$0 sm:$0xff] }
 0x318   : > { %v1952_v47 = vadd.f32 %v1938_v11, %v1927_v14  ;;  %v1955_v33 = vmax.f32 %v1951_v32, 0.0  ;;  %v2632_v11 = vld [vmem:[%s3068_s11] sm:$0xff]  }
 0x319   : > { %v2393_v32 = vld [vmem:[%s3066_s2 + $0x19] ss:$0 sm:$0xff] }
 0x31a   : > { %v1956_v18 = vmax.f32 %v1952_v47, 0.0  ;;  %v1959_v24 = vpack.c.bf16 %v1955_v33, %v1955_v33  ;;  %2510 = vmatpush3.bf16.msra.mxu1 %v1995_v25 }
 0x31c   : > { %v1960_v31 = vpack.c.bf16 %v1956_v18, %v1956_v18 }
 0x31e   : > { %2043 = vmatprep.mubr.bf16.mxu0 %v1960_v31 }
 0x31f   : > { %2044 = vmatmul.mubr.bf16.vlgmr.msra.gmra.mxu0 %v1959_v24 }
 0x320   : > { %2527 = vmatpush3.bf16.msra.mxu0 %v2625_v50  ;;  %2542 = vmatprep.mubr.msk.bf16.mxu0 %vm2829_vm5, %v2828_v35 }
 0x321   : > { %2528 = vmatprep.subr.bf16.mxu0 %v2828_v35 }
 0x324   : > { %2529 = vmatpush3.bf16.msra.mxu0 %v2626_v51 }
 0x325   : > { %2530 = vmatprep.subr.bf16.mxu0 %v2828_v35 }
 0x328   : > { %2531 = vmatpush3.bf16.msra.mxu0 %v2627_v53 }
 0x329   : > { %2532 = vmatprep.subr.bf16.mxu0 %v2828_v35 }
 0x32c   : > { %2533 = vmatpush3.bf16.msra.mxu0 %v2628_v60 }
 0x32d   : > { %2534 = vmatprep.subr.bf16.mxu0 %v2828_v35 }
 0x330   : > { %2535 = vmatpush3.bf16.msra.mxu0 %v2629_v3 }
 0x331   : > { %2536 = vmatprep.subr.bf16.mxu0 %v2828_v35 }
 0x334   : > { %2537 = vmatpush3.bf16.msra.mxu0 %v2630_v5 }
 0x335   : > { %2538 = vmatprep.subr.bf16.mxu0 %v2828_v35 }
 0x338   : > { %2539 = vmatpush3.bf16.msra.mxu0 %v2631_v7 }
 0x339   : > { %2540 = vmatprep.subr.bf16.mxu0 %v2828_v35 }
 0x33c   : > { %2541 = vmatpush3.bf16.msra.mxu0 %v2632_v11 }
 0x34f   : > { %v1775_v26 = vpop.f32.mrf.mxu0 }
 0x350   : > { %v1816_v46 = vpop.f32.mrf.mxu1 }
 0x351   : > { %v1817_v16 = vadd.f32 %v1816_v46, %v1775_v26  ;;  %v1777_v22 = vpop.f32.mrf.mxu0 }
 0x352   : > { %v1818_v41 = vpop.f32.mrf.mxu1 }
 0x353   : > { %v1779_v34 = vpop.f32.mrf.mxu0  ;;  %v1819_v10 = vadd.f32 %v1818_v41, %v1777_v22 }
 0x354   : > { %v1820_v45 = vpop.f32.mrf.mxu1 }
 0x355   : > { %v1780_v48 = vpop.f32.mrf.mxu0 }
 0x356   : > { %v1821_v49 = vpop.f32.mrf.mxu1 }
 0x38f   : > { %v1857_v37 = vpop.f32.mrf.mxu0 }
 0x390   : > { %v1858_v28 = vadd.f32 %v1857_v37, %v1817_v16  ;;  %v1898_v6 = vpop.f32.mrf.mxu1 }
 0x391   : > { %v1859_v63 = vpop.f32.mrf.mxu0 }
 0x392   : > { %v1899_v62 = vadd.f32 %v1898_v6, %v1858_v28  ;;  %v1860_v54 = vadd.f32 %v1859_v63, %v1819_v10  ;;  %v1900_v19 = vpop.f32.mrf.mxu1 }
 0x393   : > { %v1861_v52 = vpop.f32.mrf.mxu0 }
 0x394   : > { %v1928_v55 = vmul.f32 %v1917_v38, %v1899_v62  ;;  %v1901_v29 = vadd.f32 %v1900_v19, %v1860_v54  ;;  %v1902_v39 = vpop.f32.mrf.mxu1 }
 0x395   : > { %v1862_v56 = vpop.f32.mrf.mxu0 }
 0x396   : > { %v1953_v61 = vadd.f32 %v1942_v27, %v1928_v55  ;;  %v1929_v40 = vmul.f32 %v1921_v58, %v1901_v29  ;;  %v1903_v9 = vpop.f32.mrf.mxu1 }
 0x398   : > { %v1954_v0 = vadd.f32 %v1946_v57, %v1929_v40  ;;  %v1957_v36 = vmax.f32 %v1953_v61, 0.0 }
 0x39a   : > { %v1958_v42 = vmax.f32 %v1954_v0, 0.0  ;;  %v1961_v23 = vpack.c.bf16 %v1957_v36, %v1957_v36 }
 0x39c   : > { %v1962_v21 = vpack.c.bf16 %v1958_v42, %v1958_v42 }
 0x39e   : > { %2083 = vmatprep.mubr.bf16.mxu1 %v1962_v21 }
 0x39f   : > { %2084 = vmatmul.mubr.bf16.vlgmr.msra.gmra.mxu1 %v1961_v23 }
 0x3df   : > { %v2489_v12 = vpop.f32.mrf.mxu0 }
 0x3e1   : > { %v2490_v59 = vpop.f32.mrf.mxu0 }
 0x3e2   : > { %v2491_v43 = vadd.f32 %v2490_v59, %v2489_v12 }
 0x3e3   : > { %v2492_v20 = vpop.f32.mrf.mxu0 }
 0x3e5   : > { %v2493_v4 = vpop.f32.mrf.mxu0 }
 0x45f   : > { %v2511_v2 = vpop.f32.mrf.mxu1 }
 0x461   : > { %v2512_v13 = vpop.f32.mrf.mxu1 }
 0x462   : > { %v2513_v8 = vadd.f32 %v2512_v13, %v2511_v2 }
 0x463   : > { %v2514_v14 = vpop.f32.mrf.mxu1 }
 0x464   : > { %v2086_v15 = vadd.f32 %v2513_v8, %v2491_v43 }
 0x465   : > { %v2515_v17 = vpop.f32.mrf.mxu1 }
 0x466   : > { %v2095_v47 = vmul.f32 %v2393_v32, %v2086_v15 }
 0x468   : > { %v2100_v44 = vadd.f32 %v2394_v1, %v2095_v47 }
 0x46a   : > { %v2101_v33 = vmax.f32 %v2100_v44, 0.0 }
 0x46c   : > { %v2102_v18 = vpack.c.bf16 %v2101_v33, %v2101_v33 }
 0x46e   : > { %2543 = vmatmul.mubr.bf16.vlgmr.msra.gmra.mxu0 %v2102_v18 }
 0x52e   : > { %v2205_v25 = vpop.f32.mrf.mxu0 }
 0x52f   : > { %v2206_v31 = vadd.f32 %v2395_v30, %v2205_v25 }
 0x530   : > { %v2544_v24 = vpop.f32.mrf.mxu0  ;;  %2214 = sbr.rel (%p2404_p6) target bundleno = 1334 (0x536), region = 64 }
 0x532   : > { %v2208_v26 = vpop.f32.mrf.mxu0 }
 0x534   : > { %v2545_v46 = vpop.f32.mrf.mxu0 }
 0x535   : > { %2215 = vst [vmem:[#allocation10] sm:$0x3] %v2206_v31 }
 0x536 PF: > { %p3714_p9 = scmp.eq.s32.totalorder %s2885_s25, 0 }
 0x538   : > { %2219 = sbr.rel (%p3714_p9) target bundleno = 1345 (0x541), region = 68 }
 0x53d   : > { %v2220_v16 = vld [vmem:[#allocation10] sm:$0x3] }
 0x53e   : > { %v2221_v22 = vadd.f32 %v2220_v16, %v2206_v31 }
 0x540   : > { %2222 = vst [vmem:[#allocation10] sm:$0x3] %v2221_v22 }
 0x541 PF: > { %p2576_p11 = scmp.eq.s32.totalorder %s2885_s25, 1  ;;  %s2830_s9 = smov [#allocation10]  }
 0x542   : > { %s2230_s10 = sshll.u32 %s2830_s9, 4  ;;  %s2231_s10 = int_to_ptr.vmem [resolvable:$true] %s2230_s10 }
 0x543   : > { %s2745_s16 = scalar_lea.vmem %s2231_s10, 32  ;;  %p2752_p7 = scmp.lt.s32.totalorder %s2231_s10, %s2231_s10 }
 0x544   : > { %p2746_p12 = scmp.ne.s32.totalorder %s2231_s10, %s2745_s16  ;;  %p2753_p0 = scmp.lt.s32.totalorder %s2745_s16, %s2745_s16 }
 0x546   : > { %p2747_p13 = pnand %p2746_p12, %p2576_p11  ;;  %p2754_p1 = por %p2753_p0, %p2752_p7 }
 0x548   : > { %p2748_p5 = pneg %p2747_p13 }
 0x54a   : > { %p2755_p2 = pnand %p2754_p1, %p2748_p5 }
 0x54c   : > { %2758 = shalt.err (!%p2755_p2)
}
 0x54d   : > { %2559 = dma.vmem_to_hbm [thread:$0]  (%p2576_p11), %s2231_s10, 32, %s3700_s6, [#allocation4]  }
 0x54e   : > { %2798 = dma.done.wait (%p2576_p11), [#allocation4], 32  }
 0x54f   : > { %2800 = vsyncadd (%p2576_p11), [#allocation4], 4294967264 }
 0x550 PF: > { %s3715_s14 = sld [smem:[#allocation15_spill]]  ;;  %p23_p3 = scmp.ge.s32.totalorder %s2888_s26, 4  }
 0x551   : > { %s3716_s21 = smov %s2807_s22  ;;  %s3717_s22 = smov %s2811_s23 }
 0x552   : > { %s3719_s24 = smov %s2888_s26  ;;  %25 = sbr.rel (!%p23_p3) target bundleno = 11 (0xb), region = 135 }
 0x556   : > { %s3718_s23 = smov %s3715_s14 }
 0x557   :  { %2243 = vsyncpa [#allocation3], 1 }
 0x558   :  { %2245 = vsyncpa [#allocation3 + $0x1], 1 }
 0x559   :  { %2246 = vsyncpa [#allocation6], 1 }
 0x55a   :  { %2248 = vsyncpa [#allocation6 + $0x1], 1 }
 0x55b   :  { %2249 = vsyncpa [#allocation9], 1 }
 0x55c   :  { %2251 = vsyncpa [#allocation9 + $0x1], 1 }
 0x55d   :  { %2252 = vsyncpa [#allocation4], 1 }
 0x55e   :  { %2254 = vsyncpa [#allocation4 + $0x1], 1 }

</bundles_post_ra>
